<compile_context>
chip_gen: v7x
topology: tpu7x:2x2x1
jax: 0.10.0
libtpu: 0.0.40
codegen_flags: <defaults>
</compile_context>

<pallas_src>
import functools

import jax
import jax.numpy as jnp
import numpy as np
from jax.experimental import pallas as pl
from jax.experimental.pallas import tpu as pltpu

# tanh-GELU on the EUP (perf review). ~1e-3 deviation vs nn.GELU() exact erf --
# this is an explicit, documented deviation; set to False for exact-erf numerics.
GELU_APPROXIMATE = True


# ----------------------------------------------------------------------------
# Kernel
# ----------------------------------------------------------------------------
def _mbconv_residual_kernel(
    x_ref,       # (1, C, N)   f32   N = Bt*H*W: Bt images side-by-side on lanes
    w1t_ref,     # (hid, C)    bf16  1x1 expand conv weight (BN1 folded in)
    b1_ref,      # (hid, 1)    f32   folded bias
    dwt_ref,     # (hid, 9)    f32   3x3 depthwise weights, col = ky*3+kx (BN2 folded)
    bdw_ref,     # (hid, 1)    f32   folded depthwise bias
    sew1_ref,    # (hid, se)   f32   SE reduce linear (no bias)
    sew2t_ref,   # (hid, se)   f32   SE expand linear, transposed (no bias)
    w3t_ref,     # (C, hid)    bf16  1x1 project conv weight (BN3 folded in)
    b3_ref,      # (C, 1)      f32   folded bias
    o_ref,       # (1, C, N)   f32   output (lane-dense store)
    *, H, W, Bt,
):
    HW = H * W
    N = Bt * HW
    x = x_ref[0]                                                    # (C, N) f32

    # ---- 1x1 expand conv (+ folded BN1): one MXU pass over all fused images ----
    h = jnp.dot(w1t_ref[...], x.astype(jnp.bfloat16),
                preferred_element_type=jnp.float32) + b1_ref[...]   # (hid, N) f32
    h = jax.nn.gelu(h, approximate=GELU_APPROXIMATE)

    # ---- 3x3 depthwise conv, stride 1, padding 1 (groups = hid), folded BN2 ----
    # XLU lane rotations (pltpu.roll) + iota edge masks; no padded VMEM copy and no
    # lane-misaligned slices.  Rolls wrap circularly, but every wrapped / cross-image
    # contribution is killed by the row masks (mod HW) or the column masks (mod W).
    dwt = dwt_ref[...]                                              # (hid, 9) hoisted
    flat = jax.lax.broadcasted_iota(jnp.int32, (1, N), 1)
    col = flat % W                                                  # column inside row
    rpos = flat % HW                                                # position inside image
    mask_l = (col >= 1).astype(jnp.float32)        # source column col-1 exists
    mask_r = (col <= W - 2).astype(jnp.float32)    # source column col+1 exists
    mask_u = (rpos >= W).astype(jnp.float32)       # source row-1 exists (image boundary too)
    mask_d = (rpos < HW - W).astype(jnp.float32)   # source row+1 exists (image boundary too)

    def roll(v, s):                                # s > 0: out[i] = v[(i - s) mod N]
        return pltpu.roll(v, shift=s % N, axis=1)

    h_l = roll(h, 1) * mask_l                      # h[i-1], column-masked (dx = -1)
    h_r = roll(h, -1) * mask_r                     # h[i+1], column-masked (dx = +1)

    # Combine the three dx taps of each kernel row first, then one +-W row roll + row mask.
    s_up = h_l * dwt[:, 0:1] + h * dwt[:, 1:2] + h_r * dwt[:, 2:3]   # ky = 0 (dy = -1)
    s_mid = h_l * dwt[:, 3:4] + h * dwt[:, 4:5] + h_r * dwt[:, 5:6]  # ky = 1 (dy =  0)
    s_dn = h_l * dwt[:, 6:7] + h * dwt[:, 7:8] + h_r * dwt[:, 8:9]   # ky = 2 (dy = +1)

    acc = roll(s_up, W) * mask_u + s_mid + roll(s_dn, -W) * mask_d   # (hid, N)
    h = jax.nn.gelu(acc + bdw_ref[...], approximate=GELU_APPROXIMATE)

    # ---- Squeeze-Excitation per image: mean -> Linear -> SiLU -> Linear -> Sigmoid -> scale
    # M=1 matmuls stay off the MXU (broadcast-mul + XLU reduce).  Pooling must be
    # per-image, so loop over the Bt (static, small) 128-aligned lane slices.
    sew1 = sew1_ref[...]
    sew2t = sew2t_ref[...]
    pieces = []
    for b in range(Bt):
        hb = h[:, b * HW:(b + 1) * HW]                              # (hid, HW)
        pooled = jnp.mean(hb, axis=1, keepdims=True)                # (hid, 1)
        g = jnp.sum(sew1 * pooled, axis=0, keepdims=True)           # (1, se)
        g = g * jax.nn.sigmoid(g)                                   # SiLU
        g = jnp.sum(sew2t * g, axis=1, keepdims=True)               # (hid, 1)
        pieces.append(hb * jax.nn.sigmoid(g))
    h = pieces[0] if Bt == 1 else jnp.concatenate(pieces, axis=1)   # (hid, N)

    # ---- 1x1 project conv (+ folded BN3) + residual; lane-dense store ----
    out = jnp.dot(w3t_ref[...], h.astype(jnp.bfloat16),
                  preferred_element_type=jnp.float32) + b3_ref[...]  # (C, N) f32
    # TODO(synk): Dropsample with prob>0 in training mode (stochastic per-sample drop)
    # is not implemented; prob=0 / eval mode is the identity, as used here.
    o_ref[0] = (out + x).astype(o_ref.dtype)


# ----------------------------------------------------------------------------
# Wrapper
# ----------------------------------------------------------------------------
def _pick_vmem_limit(C, hid, N):
    # Per-step live VMEM: double-buffered x/out blocks + ~10 (hid, N) f32 temporaries
    # (h, h_l, h_r, row sums, acc, masks) + small weights/slack.
    need = 4 * C * N * 4 + 10 * hid * N * 4 + (2 << 20)
    try:   # generation-aware cap (v7x: 64 MiB VMEM/TC; v5e/v6e: 128 MiB)
        cap = getattr(pltpu.get_tpu_info(), "vmem_capacity_bytes", 64 << 20)
    except Exception:
        cap = 64 << 20
    return int(min(max(need, 32 << 20), int(cap * 0.75)))


def mbconv_residual(x_nchw, kp, *, batch_tile=1):
    """x_nchw: (B, C, H, W) f32.  kp: output of prepare_kernel_params."""
    B, C, H, W = x_nchw.shape
    HW = H * W
    Bt = batch_tile
    assert B % Bt == 0, "batch must be divisible by batch_tile"
    G = B // Bt
    N = Bt * HW
    hid = kp["w1t"].shape[0]

    x = x_nchw.astype(jnp.float32).reshape(B, C, HW)
    if Bt == 1:
        xf = x                                                     # (G, C, HW), no transpose
    else:
        # Fold Bt images side-by-side on the lane axis (layout plumbing only).
        xf = x.reshape(G, Bt, C, HW).transpose(0, 2, 1, 3).reshape(G, C, N)

    weights = [kp["w1t"], kp["b1"], kp["dwt"], kp["bdw"],
               kp["sew1"], kp["sew2t"], kp["w3t"], kp["b3"]]
    full = lambda a: pl.BlockSpec(a.shape, lambda g: (0,) * a.ndim)

    out = pl.pallas_call(
        functools.partial(_mbconv_residual_kernel, H=H, W=W, Bt=Bt),
        out_shape=jax.ShapeDtypeStruct((G, C, N), jnp.float32),
        grid=(G,),
        in_specs=[pl.BlockSpec((1, C, N), lambda g: (g, 0, 0))]
                 + [full(w) for w in weights],
        out_specs=pl.BlockSpec((1, C, N), lambda g: (g, 0, 0)),
        compiler_params=pltpu.CompilerParams(
            dimension_semantics=("parallel",),
            vmem_limit_bytes=_pick_vmem_limit(C, hid, N),
        ),
        # Note: input_output_aliases={0: 0} / bf16 I/O would halve HBM traffic when the
        # caller donates x and tolerates bf16 activations; omitted (low priority here).
    )(xf, *weights)

    if Bt == 1:
        return out.reshape(B, C, H, W)
    return out.reshape(G, C, Bt, HW).transpose(0, 2, 1, 3).reshape(B, C, H, W)


# ----------------------------------------------------------------------------
# Parameters: raw (module-faithful) init + wrapper-time BN folding / transposition
# ----------------------------------------------------------------------------
def init_params(key, dim, expansion_rate=4, shrinkage_rate=0.25):
    hid = int(expansion_rate * dim)
    se = int(hid * shrinkage_rate)
    ks = jax.random.split(key, 20)
    n = lambda k, s, scale=0.1: jax.random.normal(k, s, jnp.float32) * scale
    u = lambda k, s: jax.random.uniform(k, s, jnp.float32, 0.5, 1.5)
    bn = lambda k1, k2, k3, k4, w: dict(gamma=1.0 + n(k1, (w,)), beta=n(k2, (w,)),
                                        mean=n(k3, (w,)), var=u(k4, (w,)))
    return dict(
        w1=n(ks[0], (dim, hid)), b1=n(ks[1], (hid,)),
        bn1=bn(ks[2], ks[3], ks[4], ks[5], hid),
        dw=n(ks[6], (9, hid)), bdw=n(ks[7], (hid,)),
        bn2=bn(ks[8], ks[9], ks[10], ks[11], hid),
        sew1=n(ks[12], (hid, se)), sew2=n(ks[13], (se, hid)),
        w3=n(ks[14], (hid, dim)), b3=n(ks[15], (dim,)),
        bn3=bn(ks[16], ks[17], ks[18], ks[19], dim),
    )


def _fold_bn(bn, eps=1e-5):
    scale = bn["gamma"] / jnp.sqrt(bn["var"] + eps)
    shift = bn["beta"] - bn["mean"] * scale
    return scale, shift


def prepare_kernel_params(p):
    """Fold eval-mode BN into conv weights, transpose into channels-major layout,
    and store MXU weights as bf16 (activations are cast in-kernel)."""
    s1, sh1 = _fold_bn(p["bn1"])
    s2, sh2 = _fold_bn(p["bn2"])
    s3, sh3 = _fold_bn(p["bn3"])
    w1f = p["w1"] * s1[None, :]
    b1f = p["b1"] * s1 + sh1
    dwf = p["dw"] * s2[None, :]
    bdwf = p["bdw"] * s2 + sh2
    w3f = p["w3"] * s3[None, :]
    b3f = p["b3"] * s3 + sh3
    return dict(
        w1t=w1f.T.astype(jnp.bfloat16),      # (hid, C)
        b1=b1f[:, None],                     # (hid, 1)
        dwt=dwf.T,                           # (hid, 9)
        bdw=bdwf[:, None],                   # (hid, 1)
        sew1=p["sew1"],                      # (hid, se)
        sew2t=p["sew2"].T,                   # (hid, se)
        w3t=w3f.T.astype(jnp.bfloat16),      # (C, hid)
        b3=b3f[:, None],                     # (C, 1)
    )


# ----------------------------------------------------------------------------
# Pure-JAX reference (module structure; mirrors the kernel's numerics policy:
# bf16 MXU weights/activations with f32 accumulation, tanh/exact GELU per flag)
# ----------------------------------------------------------------------------
def reference(x_nchw, p):
    s1, sh1 = _fold_bn(p["bn1"])
    s2, sh2 = _fold_bn(p["bn2"])
    s3, sh3 = _fold_bn(p["bn3"])
    w1 = (p["w1"] * s1[None, :]).astype(jnp.bfloat16)
    b1 = p["b1"] * s1 + sh1
    dw = p["dw"] * s2[None, :]
    bdw = p["bdw"] * s2 + sh2
    w3 = (p["w3"] * s3[None, :]).astype(jnp.bfloat16)
    b3 = p["b3"] * s3 + sh3

    x = jnp.transpose(x_nchw, (0, 2, 3, 1)).astype(jnp.float32)     # NHWC
    B, H, W, C = x.shape
    hid = p["w1"].shape[1]
    xf = x.reshape(B, H * W, C)

    h = jnp.einsum("bnc,ch->bnh", xf.astype(jnp.bfloat16), w1,
                   preferred_element_type=jnp.float32) + b1
    h = jax.nn.gelu(h, approximate=GELU_APPROXIMATE)
    hw = h.reshape(B, H, W, hid)
    pad = jnp.pad(hw, ((0, 0), (1, 1), (1, 1), (0, 0)))
    acc = jnp.zeros_like(hw)
    for ky in range(3):
        for kx in range(3):
            acc = acc + pad[:, ky:ky + H, kx:kx + W, :] * dw[ky * 3 + kx]
    h = jax.nn.gelu(acc.reshape(B, H * W, hid) + bdw, approximate=GELU_APPROXIMATE)
    pooled = jnp.mean(h, axis=1, keepdims=True)
    g = pooled @ p["sew1"]
    g = g * jax.nn.sigmoid(g)
    g = jax.nn.sigmoid(g @ p["sew2"])
    h = h * g
    out = jnp.einsum("bnh,hc->bnc", h.astype(jnp.bfloat16), w3,
                     preferred_element_type=jnp.float32) + b3
    out = out + xf
    return jnp.transpose(out.reshape(B, H, W, C), (0, 3, 1, 2))


if __name__ == "__main__":
    key = jax.random.PRNGKey(0)
    kx, kp = jax.random.split(key)

    # dim_in == dim_out, stride 1 -> residual branch active.  batch_tile=2 fuses two
    # images per grid step (lane width 512) while keeping 2 grid steps for megacore.
    B, C, H, W = 4, 8, 16, 16
    x = jax.random.normal(kx, (B, C, H, W), jnp.float32)
    raw_params = init_params(kp, dim=C)
    kernel_params = prepare_kernel_params(raw_params)

    out = jax.block_until_ready(mbconv_residual(x, kernel_params, batch_tile=2))
    ref = jax.block_until_ready(reference(x, raw_params))
    np.testing.assert_allclose(np.asarray(out), np.asarray(ref), rtol=2e-3, atol=2e-3)

    print("KERNEL_OK")
</pallas_src>

<mosaic_0001>
module attributes {stable_mosaic.version = 11 : i64} {
  func.func @_mbconv_residual_kernel(%arg0: i32, %arg1: memref<1x8x512xf32, #tpu.memory_space<vmem>>, %arg2: memref<32x8xbf16, #tpu.memory_space<vmem>>, %arg3: memref<32x1xf32, #tpu.memory_space<vmem>>, %arg4: memref<32x9xf32, #tpu.memory_space<vmem>>, %arg5: memref<32x1xf32, #tpu.memory_space<vmem>>, %arg6: memref<32x8xf32, #tpu.memory_space<vmem>>, %arg7: memref<32x8xf32, #tpu.memory_space<vmem>>, %arg8: memref<8x32xbf16, #tpu.memory_space<vmem>>, %arg9: memref<8x1xf32, #tpu.memory_space<vmem>>, %arg10: memref<1x8x512xf32, #tpu.memory_space<vmem>>) attributes {dimension_semantics = [#tpu.dimension_semantics<parallel>], iteration_bounds = array<i64: 2>, scalar_prefetch = 0 : i64, scratch_operands = 0 : i64, tpu.core_type = #tpu.core_type<tc>, window_params = [{transform_indices = @transform_0, window_bounds = array<i64: 1, 8, 512>}, {pipeline_mode = #tpu.pipeline_mode<synchronous>, transform_indices = @transform_1, window_bounds = array<i64: 32, 8>}, {pipeline_mode = #tpu.pipeline_mode<synchronous>, transform_indices = @transform_2, window_bounds = array<i64: 32, 1>}, {pipeline_mode = #tpu.pipeline_mode<synchronous>, transform_indices = @transform_3, window_bounds = array<i64: 32, 9>}, {pipeline_mode = #tpu.pipeline_mode<synchronous>, transform_indices = @transform_4, window_bounds = array<i64: 32, 1>}, {pipeline_mode = #tpu.pipeline_mode<synchronous>, transform_indices = @transform_5, window_bounds = array<i64: 32, 8>}, {pipeline_mode = #tpu.pipeline_mode<synchronous>, transform_indices = @transform_6, window_bounds = array<i64: 32, 8>}, {pipeline_mode = #tpu.pipeline_mode<synchronous>, transform_indices = @transform_7, window_bounds = array<i64: 8, 32>}, {pipeline_mode = #tpu.pipeline_mode<synchronous>, transform_indices = @transform_8, window_bounds = array<i64: 8, 1>}, {transform_indices = @transform_9, window_bounds = array<i64: 1, 8, 512>}]} {
    %c0 = arith.constant 0 : index
    %c0_0 = arith.constant 0 : index
    %c0_1 = arith.constant 0 : index
    %0 = vector.load %arg1[%c0, %c0_0, %c0_1] : memref<1x8x512xf32, #tpu.memory_space<vmem>>, vector<1x8x512xf32>
    %1 = vector.shape_cast %0 : vector<1x8x512xf32> to vector<8x512xf32>
    %c0_2 = arith.constant 0 : index
    %c0_3 = arith.constant 0 : index
    %2 = vector.load %arg2[%c0_2, %c0_3] : memref<32x8xbf16, #tpu.memory_space<vmem>>, vector<32x8xbf16>
    %3 = arith.truncf %1 : vector<8x512xf32> to vector<8x512xbf16>
    %cst = arith.constant dense<0.000000e+00> : vector<32x512xf32>
    %4 = tpu.matmul %2, %3, %cst {dimension_numbers = #tpu.dot_dimension_numbers<[1], [0], [0], [1], [0, 0, 1, 1], [], []>} : vector<32x8xbf16>, vector<8x512xbf16>, vector<32x512xf32> -> vector<32x512xf32>
    %c0_4 = arith.constant 0 : index
    %c0_5 = arith.constant 0 : index
    %5 = vector.load %arg3[%c0_4, %c0_5] : memref<32x1xf32, #tpu.memory_space<vmem>>, vector<32x1xf32>
    %6 = vector.broadcast %5 : vector<32x1xf32> to vector<32x512xf32>
    %7 = arith.addf %4, %6 : vector<32x512xf32>
    %8 = arith.mulf %7, %7 : vector<32x512xf32>
    %9 = arith.mulf %7, %8 : vector<32x512xf32>
    %cst_6 = arith.constant 4.471500e-02 : f32
    %10 = vector.broadcast %cst_6 : f32 to vector<32x512xf32>
    %11 = arith.mulf %10, %9 : vector<32x512xf32>
    %12 = arith.addf %7, %11 : vector<32x512xf32>
    %cst_7 = arith.constant 0.797884583 : f32
    %13 = vector.broadcast %cst_7 : f32 to vector<32x512xf32>
    %14 = arith.mulf %13, %12 : vector<32x512xf32>
    %15 = math.tanh %14 : vector<32x512xf32>
    %cst_8 = arith.constant 1.000000e+00 : f32
    %16 = vector.broadcast %cst_8 : f32 to vector<32x512xf32>
    %17 = arith.addf %16, %15 : vector<32x512xf32>
    %cst_9 = arith.constant 5.000000e-01 : f32
    %18 = vector.broadcast %cst_9 : f32 to vector<32x512xf32>
    %19 = arith.mulf %18, %17 : vector<32x512xf32>
    %20 = arith.mulf %7, %19 : vector<32x512xf32>
    %c0_10 = arith.constant 0 : index
    %c0_11 = arith.constant 0 : index
    %21 = vector.load %arg4[%c0_10, %c0_11] : memref<32x9xf32, #tpu.memory_space<vmem>>, vector<32x9xf32>
    %22 = tpu.iota {dimensions = array<i32: 1>} : vector<1x512xi32>
    %c16_i32 = arith.constant 16 : i32
    %c0_i32 = arith.constant 0 : i32
    %23 = arith.cmpi eq, %c16_i32, %c0_i32 : i32
    %c1_i32 = arith.constant 1 : i32
    %24 = arith.select %23, %c1_i32, %c16_i32 : i32
    %25 = vector.broadcast %24 : i32 to vector<1x512xi32>
    %26 = arith.remsi %22, %25 : vector<1x512xi32>
    %c0_i32_12 = arith.constant 0 : i32
    %27 = vector.broadcast %c0_i32_12 : i32 to vector<1x512xi32>
    %28 = arith.cmpi ne, %26, %27 : vector<1x512xi32>
    %c0_i32_13 = arith.constant 0 : i32
    %29 = vector.broadcast %c0_i32_13 : i32 to vector<1x512xi32>
    %30 = arith.cmpi slt, %26, %29 : vector<1x512xi32>
    %c0_i32_14 = arith.constant 0 : i32
    %31 = arith.cmpi slt, %24, %c0_i32_14 : i32
    %32 = vector.broadcast %31 : i1 to vector<1x512xi1>
    %33 = vector.broadcast %32 : vector<1x512xi1> to vector<1x512xi1>
    %34 = arith.xori %30, %33 : vector<1x512xi1>
    %35 = arith.andi %34, %28 : vector<1x512xi1>
    %36 = vector.broadcast %24 : i32 to vector<1x512xi32>
    %37 = arith.addi %26, %36 : vector<1x512xi32>
    %38 = arith.select %35, %37, %26 : vector<1x512xi1>, vector<1x512xi32>
    %c256_i32 = arith.constant 256 : i32
    %c0_i32_15 = arith.constant 0 : i32
    %39 = arith.cmpi eq, %c256_i32, %c0_i32_15 : i32
    %c1_i32_16 = arith.constant 1 : i32
    %40 = arith.select %39, %c1_i32_16, %c256_i32 : i32
    %41 = vector.broadcast %40 : i32 to vector<1x512xi32>
    %42 = arith.remsi %22, %41 : vector<1x512xi32>
    %c0_i32_17 = arith.constant 0 : i32
    %43 = vector.broadcast %c0_i32_17 : i32 to vector<1x512xi32>
    %44 = arith.cmpi ne, %42, %43 : vector<1x512xi32>
    %c0_i32_18 = arith.constant 0 : i32
    %45 = vector.broadcast %c0_i32_18 : i32 to vector<1x512xi32>
    %46 = arith.cmpi slt, %42, %45 : vector<1x512xi32>
    %c0_i32_19 = arith.constant 0 : i32
    %47 = arith.cmpi slt, %40, %c0_i32_19 : i32
    %48 = vector.broadcast %47 : i1 to vector<1x512xi1>
    %49 = vector.broadcast %48 : vector<1x512xi1> to vector<1x512xi1>
    %50 = arith.xori %46, %49 : vector<1x512xi1>
    %51 = arith.andi %50, %44 : vector<1x512xi1>
    %52 = vector.broadcast %40 : i32 to vector<1x512xi32>
    %53 = arith.addi %42, %52 : vector<1x512xi32>
    %54 = arith.select %51, %53, %42 : vector<1x512xi1>, vector<1x512xi32>
    %c1_i32_20 = arith.constant 1 : i32
    %55 = vector.broadcast %c1_i32_20 : i32 to vector<1x512xi32>
    %56 = arith.cmpi sge, %38, %55 : vector<1x512xi32>
    %57 = arith.extui %56 : vector<1x512xi1> to vector<1x512xi32>
    %58 = arith.sitofp %57 : vector<1x512xi32> to vector<1x512xf32>
    %c14_i32 = arith.constant 14 : i32
    %59 = vector.broadcast %c14_i32 : i32 to vector<1x512xi32>
    %60 = arith.cmpi sle, %38, %59 : vector<1x512xi32>
    %61 = arith.extui %60 : vector<1x512xi1> to vector<1x512xi32>
    %62 = arith.sitofp %61 : vector<1x512xi32> to vector<1x512xf32>
    %c16_i32_21 = arith.constant 16 : i32
    %63 = vector.broadcast %c16_i32_21 : i32 to vector<1x512xi32>
    %64 = arith.cmpi sge, %54, %63 : vector<1x512xi32>
    %65 = arith.extui %64 : vector<1x512xi1> to vector<1x512xi32>
    %66 = arith.sitofp %65 : vector<1x512xi32> to vector<1x512xf32>
    %c240_i32 = arith.constant 240 : i32
    %67 = vector.broadcast %c240_i32 : i32 to vector<1x512xi32>
    %68 = arith.cmpi slt, %54, %67 : vector<1x512xi32>
    %69 = arith.extui %68 : vector<1x512xi1> to vector<1x512xi32>
    %70 = arith.sitofp %69 : vector<1x512xi32> to vector<1x512xf32>
    %c1_i32_22 = arith.constant 1 : i32
    %71 = tpu.dynamic_rotate %20 by %c1_i32_22 dim 1 : vector<32x512xf32>, i32 -> vector<32x512xf32>
    %72 = vector.broadcast %58 : vector<1x512xf32> to vector<32x512xf32>
    %73 = arith.mulf %71, %72 : vector<32x512xf32>
    %c511_i32 = arith.constant 511 : i32
    %74 = tpu.dynamic_rotate %20 by %c511_i32 dim 1 : vector<32x512xf32>, i32 -> vector<32x512xf32>
    %75 = vector.broadcast %62 : vector<1x512xf32> to vector<32x512xf32>
    %76 = arith.mulf %74, %75 : vector<32x512xf32>
    %77 = vector.extract_strided_slice %21 {offsets = [0, 0], sizes = [32, 1], strides = [1, 1]} : vector<32x9xf32> to vector<32x1xf32>
    %78 = vector.broadcast %77 : vector<32x1xf32> to vector<32x512xf32>
    %79 = arith.mulf %73, %78 : vector<32x512xf32>
    %80 = vector.extract_strided_slice %21 {offsets = [0, 1], sizes = [32, 1], strides = [1, 1]} : vector<32x9xf32> to vector<32x1xf32>
    %81 = vector.broadcast %80 : vector<32x1xf32> to vector<32x512xf32>
    %82 = arith.mulf %20, %81 : vector<32x512xf32>
    %83 = arith.addf %79, %82 : vector<32x512xf32>
    %84 = vector.extract_strided_slice %21 {offsets = [0, 2], sizes = [32, 1], strides = [1, 1]} : vector<32x9xf32> to vector<32x1xf32>
    %85 = vector.broadcast %84 : vector<32x1xf32> to vector<32x512xf32>
    %86 = arith.mulf %76, %85 : vector<32x512xf32>
    %87 = arith.addf %83, %86 : vector<32x512xf32>
    %88 = vector.extract_strided_slice %21 {offsets = [0, 3], sizes = [32, 1], strides = [1, 1]} : vector<32x9xf32> to vector<32x1xf32>
    %89 = vector.broadcast %88 : vector<32x1xf32> to vector<32x512xf32>
    %90 = arith.mulf %73, %89 : vector<32x512xf32>
    %91 = vector.extract_strided_slice %21 {offsets = [0, 4], sizes = [32, 1], strides = [1, 1]} : vector<32x9xf32> to vector<32x1xf32>
    %92 = vector.broadcast %91 : vector<32x1xf32> to vector<32x512xf32>
    %93 = arith.mulf %20, %92 : vector<32x512xf32>
    %94 = arith.addf %90, %93 : vector<32x512xf32>
    %95 = vector.extract_strided_slice %21 {offsets = [0, 5], sizes = [32, 1], strides = [1, 1]} : vector<32x9xf32> to vector<32x1xf32>
    %96 = vector.broadcast %95 : vector<32x1xf32> to vector<32x512xf32>
    %97 = arith.mulf %76, %96 : vector<32x512xf32>
    %98 = arith.addf %94, %97 : vector<32x512xf32>
    %99 = vector.extract_strided_slice %21 {offsets = [0, 6], sizes = [32, 1], strides = [1, 1]} : vector<32x9xf32> to vector<32x1xf32>
    %100 = vector.broadcast %99 : vector<32x1xf32> to vector<32x512xf32>
    %101 = arith.mulf %73, %100 : vector<32x512xf32>
    %102 = vector.extract_strided_slice %21 {offsets = [0, 7], sizes = [32, 1], strides = [1, 1]} : vector<32x9xf32> to vector<32x1xf32>
    %103 = vector.broadcast %102 : vector<32x1xf32> to vector<32x512xf32>
    %104 = arith.mulf %20, %103 : vector<32x512xf32>
    %105 = arith.addf %101, %104 : vector<32x512xf32>
    %106 = vector.extract_strided_slice %21 {offsets = [0, 8], sizes = [32, 1], strides = [1, 1]} : vector<32x9xf32> to vector<32x1xf32>
    %107 = vector.broadcast %106 : vector<32x1xf32> to vector<32x512xf32>
    %108 = arith.mulf %76, %107 : vector<32x512xf32>
    %109 = arith.addf %105, %108 : vector<32x512xf32>
    %c16_i32_23 = arith.constant 16 : i32
    %110 = tpu.dynamic_rotate %87 by %c16_i32_23 dim 1 : vector<32x512xf32>, i32 -> vector<32x512xf32>
    %111 = vector.broadcast %66 : vector<1x512xf32> to vector<32x512xf32>
    %112 = arith.mulf %110, %111 : vector<32x512xf32>
    %113 = arith.addf %112, %98 : vector<32x512xf32>
    %c496_i32 = arith.constant 496 : i32
    %114 = tpu.dynamic_rotate %109 by %c496_i32 dim 1 : vector<32x512xf32>, i32 -> vector<32x512xf32>
    %115 = vector.broadcast %70 : vector<1x512xf32> to vector<32x512xf32>
    %116 = arith.mulf %114, %115 : vector<32x512xf32>
    %117 = arith.addf %113, %116 : vector<32x512xf32>
    %c0_24 = arith.constant 0 : index
    %c0_25 = arith.constant 0 : index
    %118 = vector.load %arg5[%c0_24, %c0_25] : memref<32x1xf32, #tpu.memory_space<vmem>>, vector<32x1xf32>
    %119 = vector.broadcast %118 : vector<32x1xf32> to vector<32x512xf32>
    %120 = arith.addf %117, %119 : vector<32x512xf32>
    %121 = arith.mulf %120, %120 : vector<32x512xf32>
    %122 = arith.mulf %120, %121 : vector<32x512xf32>
    %cst_26 = arith.constant 4.471500e-02 : f32
    %123 = vector.broadcast %cst_26 : f32 to vector<32x512xf32>
    %124 = arith.mulf %123, %122 : vector<32x512xf32>
    %125 = arith.addf %120, %124 : vector<32x512xf32>
    %cst_27 = arith.constant 0.797884583 : f32
    %126 = vector.broadcast %cst_27 : f32 to vector<32x512xf32>
    %127 = arith.mulf %126, %125 : vector<32x512xf32>
    %128 = math.tanh %127 : vector<32x512xf32>
    %cst_28 = arith.constant 1.000000e+00 : f32
    %129 = vector.broadcast %cst_28 : f32 to vector<32x512xf32>
    %130 = arith.addf %129, %128 : vector<32x512xf32>
    %cst_29 = arith.constant 5.000000e-01 : f32
    %131 = vector.broadcast %cst_29 : f32 to vector<32x512xf32>
    %132 = arith.mulf %131, %130 : vector<32x512xf32>
    %133 = arith.mulf %120, %132 : vector<32x512xf32>
    %c0_30 = arith.constant 0 : index
    %c0_31 = arith.constant 0 : index
    %134 = vector.load %arg6[%c0_30, %c0_31] : memref<32x8xf32, #tpu.memory_space<vmem>>, vector<32x8xf32>
    %c0_32 = arith.constant 0 : index
    %c0_33 = arith.constant 0 : index
    %135 = vector.load %arg7[%c0_32, %c0_33] : memref<32x8xf32, #tpu.memory_space<vmem>>, vector<32x8xf32>
    %136 = vector.extract_strided_slice %133 {offsets = [0, 0], sizes = [32, 256], strides = [1, 1]} : vector<32x512xf32> to vector<32x256xf32>
    %cst_34 = arith.constant dense<0.000000e+00> : vector<32xf32>
    %137 = vector.multi_reduction <add>, %136, %cst_34 [1] : vector<32x256xf32> to vector<32xf32>
    %138 = vector.shape_cast %137 : vector<32xf32> to vector<32x1xf32>
    %cst_35 = arith.constant 2.560000e+02 : f32
    %139 = vector.broadcast %cst_35 : f32 to vector<32x1xf32>
    %140 = arith.divf %138, %139 : vector<32x1xf32>
    %141 = vector.broadcast %140 : vector<32x1xf32> to vector<32x8xf32>
    %142 = arith.mulf %134, %141 : vector<32x8xf32>
    %cst_36 = arith.constant dense<0.000000e+00> : vector<8xf32>
    %143 = vector.multi_reduction <add>, %142, %cst_36 [0] : vector<32x8xf32> to vector<8xf32>
    %144 = vector.shape_cast %143 : vector<8xf32> to vector<1x8xf32>
    %145 = arith.negf %144 : vector<1x8xf32>
    %146 = math.exp %145 : vector<1x8xf32>
    %cst_37 = arith.constant 1.000000e+00 : f32
    %147 = vector.broadcast %cst_37 : f32 to vector<1x8xf32>
    %148 = arith.addf %147, %146 : vector<1x8xf32>
    %149 = arith.divf %147, %148 : vector<1x8xf32>
    %150 = arith.mulf %144, %149 : vector<1x8xf32>
    %151 = vector.broadcast %150 : vector<1x8xf32> to vector<32x8xf32>
    %152 = arith.mulf %135, %151 : vector<32x8xf32>
    %cst_38 = arith.constant dense<0.000000e+00> : vector<32xf32>
    %153 = vector.multi_reduction <add>, %152, %cst_38 [1] : vector<32x8xf32> to vector<32xf32>
    %154 = vector.shape_cast %153 : vector<32xf32> to vector<32x1xf32>
    %155 = arith.negf %154 : vector<32x1xf32>
    %156 = math.exp %155 : vector<32x1xf32>
    %cst_39 = arith.constant 1.000000e+00 : f32
    %157 = vector.broadcast %cst_39 : f32 to vector<32x1xf32>
    %158 = arith.addf %157, %156 : vector<32x1xf32>
    %159 = arith.divf %157, %158 : vector<32x1xf32>
    %160 = vector.broadcast %159 : vector<32x1xf32> to vector<32x256xf32>
    %161 = arith.mulf %136, %160 : vector<32x256xf32>
    %162 = vector.extract_strided_slice %133 {offsets = [0, 256], sizes = [32, 256], strides = [1, 1]} : vector<32x512xf32> to vector<32x256xf32>
    %cst_40 = arith.constant dense<0.000000e+00> : vector<32xf32>
    %163 = vector.multi_reduction <add>, %162, %cst_40 [1] : vector<32x256xf32> to vector<32xf32>
    %164 = vector.shape_cast %163 : vector<32xf32> to vector<32x1xf32>
    %cst_41 = arith.constant 2.560000e+02 : f32
    %165 = vector.broadcast %cst_41 : f32 to vector<32x1xf32>
    %166 = arith.divf %164, %165 : vector<32x1xf32>
    %167 = vector.broadcast %166 : vector<32x1xf32> to vector<32x8xf32>
    %168 = arith.mulf %134, %167 : vector<32x8xf32>
    %cst_42 = arith.constant dense<0.000000e+00> : vector<8xf32>
    %169 = vector.multi_reduction <add>, %168, %cst_42 [0] : vector<32x8xf32> to vector<8xf32>
    %170 = vector.shape_cast %169 : vector<8xf32> to vector<1x8xf32>
    %171 = arith.negf %170 : vector<1x8xf32>
    %172 = math.exp %171 : vector<1x8xf32>
    %cst_43 = arith.constant 1.000000e+00 : f32
    %173 = vector.broadcast %cst_43 : f32 to vector<1x8xf32>
    %174 = arith.addf %173, %172 : vector<1x8xf32>
    %175 = arith.divf %173, %174 : vector<1x8xf32>
    %176 = arith.mulf %170, %175 : vector<1x8xf32>
    %177 = vector.broadcast %176 : vector<1x8xf32> to vector<32x8xf32>
    %178 = arith.mulf %135, %177 : vector<32x8xf32>
    %cst_44 = arith.constant dense<0.000000e+00> : vector<32xf32>
    %179 = vector.multi_reduction <add>, %178, %cst_44 [1] : vector<32x8xf32> to vector<32xf32>
    %180 = vector.shape_cast %179 : vector<32xf32> to vector<32x1xf32>
    %181 = arith.negf %180 : vector<32x1xf32>
    %182 = math.exp %181 : vector<32x1xf32>
    %cst_45 = arith.constant 1.000000e+00 : f32
    %183 = vector.broadcast %cst_45 : f32 to vector<32x1xf32>
    %184 = arith.addf %183, %182 : vector<32x1xf32>
    %185 = arith.divf %183, %184 : vector<32x1xf32>
    %186 = vector.broadcast %185 : vector<32x1xf32> to vector<32x256xf32>
    %187 = arith.mulf %162, %186 : vector<32x256xf32>
    %188 = tpu.concatenate %161, %187 in 1 : vector<32x256xf32>, vector<32x256xf32> -> vector<32x512xf32>
    %c0_46 = arith.constant 0 : index
    %c0_47 = arith.constant 0 : index
    %189 = vector.load %arg8[%c0_46, %c0_47] : memref<8x32xbf16, #tpu.memory_space<vmem>>, vector<8x32xbf16>
    %190 = arith.truncf %188 : vector<32x512xf32> to vector<32x512xbf16>
    %cst_48 = arith.constant dense<0.000000e+00> : vector<8x512xf32>
    %191 = tpu.matmul %189, %190, %cst_48 {dimension_numbers = #tpu.dot_dimension_numbers<[1], [0], [0], [1], [0, 0, 1, 1], [], []>} : vector<8x32xbf16>, vector<32x512xbf16>, vector<8x512xf32> -> vector<8x512xf32>
    %c0_49 = arith.constant 0 : index
    %c0_50 = arith.constant 0 : index
    %192 = vector.load %arg9[%c0_49, %c0_50] : memref<8x1xf32, #tpu.memory_space<vmem>>, vector<8x1xf32>
    %193 = vector.broadcast %192 : vector<8x1xf32> to vector<8x512xf32>
    %194 = arith.addf %191, %193 : vector<8x512xf32>
    %195 = arith.addf %194, %1 : vector<8x512xf32>
    %c0_51 = arith.constant 0 : index
    %c0_52 = arith.constant 0 : index
    %c0_53 = arith.constant 0 : index
    %196 = vector.load %arg10[%c0_51, %c0_52, %c0_53] : memref<1x8x512xf32, #tpu.memory_space<vmem>>, vector<1x8x512xf32>
    %197 = vector.shape_cast %196 : vector<1x8x512xf32> to vector<8x512xf32>
    %198 = vector.shape_cast %195 : vector<8x512xf32> to vector<1x8x512xf32>
    tpu.vector_store %arg10[%c0_51, %c0_52, %c0_53], %198 {strides = array<i32>} : memref<1x8x512xf32, #tpu.memory_space<vmem>>, vector<1x8x512xf32>,
    return
  }
  func.func @transform_0(%arg0: i32) -> (i32, i32, i32) {
    %c0_i32 = arith.constant 0 : i32
    %c0_i32_0 = arith.constant 0 : i32
    %c0_i32_1 = arith.constant 0 : i32
    return %arg0, %c0_i32, %c0_i32_0 : i32, i32, i32
  }
  func.func @transform_1(%arg0: i32) -> (i32, i32) {
    %c0_i32 = arith.constant 0 : i32
    %c0_i32_0 = arith.constant 0 : i32
    %c0_i32_1 = arith.constant 0 : i32
    return %c0_i32, %c0_i32_0 : i32, i32
  }
  func.func @transform_2(%arg0: i32) -> (i32, i32) {
    %c0_i32 = arith.constant 0 : i32
    %c0_i32_0 = arith.constant 0 : i32
    %c0_i32_1 = arith.constant 0 : i32
    return %c0_i32, %c0_i32_0 : i32, i32
  }
  func.func @transform_3(%arg0: i32) -> (i32, i32) {
    %c0_i32 = arith.constant 0 : i32
    %c0_i32_0 = arith.constant 0 : i32
    %c0_i32_1 = arith.constant 0 : i32
    return %c0_i32, %c0_i32_0 : i32, i32
  }
  func.func @transform_4(%arg0: i32) -> (i32, i32) {
    %c0_i32 = arith.constant 0 : i32
    %c0_i32_0 = arith.constant 0 : i32
    %c0_i32_1 = arith.constant 0 : i32
    return %c0_i32, %c0_i32_0 : i32, i32
  }
  func.func @transform_5(%arg0: i32) -> (i32, i32) {
    %c0_i32 = arith.constant 0 : i32
    %c0_i32_0 = arith.constant 0 : i32
    %c0_i32_1 = arith.constant 0 : i32
    return %c0_i32, %c0_i32_0 : i32, i32
  }
  func.func @transform_6(%arg0: i32) -> (i32, i32) {
    %c0_i32 = arith.constant 0 : i32
    %c0_i32_0 = arith.constant 0 : i32
    %c0_i32_1 = arith.constant 0 : i32
    return %c0_i32, %c0_i32_0 : i32, i32
  }
  func.func @transform_7(%arg0: i32) -> (i32, i32) {
    %c0_i32 = arith.constant 0 : i32
    %c0_i32_0 = arith.constant 0 : i32
    %c0_i32_1 = arith.constant 0 : i32
    return %c0_i32, %c0_i32_0 : i32, i32
  }
  func.func @transform_8(%arg0: i32) -> (i32, i32) {
    %c0_i32 = arith.constant 0 : i32
    %c0_i32_0 = arith.constant 0 : i32
    %c0_i32_1 = arith.constant 0 : i32
    return %c0_i32, %c0_i32_0 : i32, i32
  }
  func.func @transform_9(%arg0: i32) -> (i32, i32, i32) {
    %c0_i32 = arith.constant 0 : i32
    %c0_i32_0 = arith.constant 0 : i32
    %c0_i32_1 = arith.constant 0 : i32
    return %arg0, %c0_i32, %c0_i32_0 : i32, i32, i32
  }
}

</mosaic_0001>

<bundles_post_ra>
// kernel: tpu_custom_call.1
= control target key start
LH: loop header
LB: loop body
LE: loop exit
PB: predicated region body
PF: predicated region fallthrough
CT: control target
= control target key end

     0   :  { %14 = vsyncpa [#allocation3], 0  ;;  %s3894_s0 = inlined_call_operand.vmem [shape: f32[2,8,512], index: 0, kind: input, shape index: {}]   ;;  %s3895_s1 = inlined_call_operand.vmem [shape: bf16[32,8], index: 1, kind: input, shape index: {}]   ;;  %s3896_s2 = inlined_call_operand.vmem [shape: f32[32,1], index: 2, kind: input, shape index: {}]   ;;  %s3897_s3 = inlined_call_operand.vmem [shape: f32[32,9], index: 3, kind: input, shape index: {}]   ;;  %s3898_s4 = inlined_call_operand.vmem [shape: f32[32,1], index: 4, kind: input, shape index: {}]   ;;  %s3899_s5 = inlined_call_operand.vmem [shape: f32[32,8], index: 5, kind: input, shape index: {}]   ;;  %s3900_s6 = inlined_call_operand.vmem [shape: f32[32,8], index: 6, kind: input, shape index: {}]   ;;  %s3901_s7 = inlined_call_operand.vmem [shape: bf16[8,32], index: 7, kind: input, shape index: {}]   ;;  %s3902_s8 = inlined_call_operand.vmem [shape: f32[8,1], index: 8, kind: input, shape index: {}]   ;;  %s3903_s9 = inlined_call_operand.hbm [shape: f32[2,8,512], index: 9, kind: output, shape index: {}]  }
   0x1   :  { %16 = vsyncpa [#allocation3 + $0x1], 0  ;;  %s2398_s30 = smov 0   ;;  %s2400_s10 = smov 0  }
   0x2   :  { %s2402_s11 = smov 0   ;;  %s2404_s12 = smov 0  }
   0x3 LB: > { %s2419_s13 = sadd.s32 4294967295, %s2331_s12   ;;  %s2033_s14 = sadd.s32 4294967294, %s2331_s12   ;;  %s2331_s12 = sphi %s2404_s12, %s4054_s12   ;;  %s2327_s11 = sphi %s2402_s11, %s4053_s11   ;;  %s2323_s10 = sphi %s2400_s10, %s4052_s10   ;;  %s2319_s30 = sphi %s2398_s30, %s4051_s30  }
   0x4   : > { %s2423_s15 = sadd.s32 1, %s2331_s12   ;;  %s223_s16 = sadd.s32 1, %s2327_s11 }
   0x5   : > { %s220_s17 = ssub.s32 %s2331_s12, %s2423_s15  ;;  %p233_p0 = scmp.ne.s32.totalorder %s2327_s11, %s2323_s10 }
   0x6   : > { %p221_p1 = scmp.eq.s32.totalorder %s220_s17, 0  ;;  %p234_p2 = scmp.eq.s32.totalorder %s2419_s13, 1 }
   0x7   : > { %p239_p3 = scmp.ne.s32.totalorder %s2323_s10, %s2319_s30  ;;  %p240_p4 = scmp.eq.s32.totalorder %s2033_s14, 1 }
   0x8   : > { %s2434_s18 = scalar_select %p221_p1, %s2327_s11, %s223_s16  }
   0x9   : > { %p2436_p5 = por %p234_p2, %p233_p0  ;;  %p2440_p6 = por %p240_p4, %p239_p3 }
   0xa   : > { %p2036_p7 = scmp.ge.s32.totalorder %s2331_s12, 1  ;;  %p290_p8 = scmp.lt.s32.totalorder %s2331_s12, 3 }
   0xc   : > { %p291_p9 = pnand %p2036_p7, %p290_p8 }
   0xe   : > { %294 = sbr.rel (%p291_p9) target bundleno = 1237 (0x4d5), region = 56 }
  0x15   : > { %p326_p10 = scmp.lt.s32.totalorder %s2419_s13, 1  ;;  %v2333_v0 = vmov 0   ;;  %v346_v1 = vld [vmem:[%s3896_s2 + $0x10] sm:$0xff]  ;;  %v347_v2 = vld [vmem:[%s3896_s2 + $0x18] sm:$0xff]  ;;  %v344_v3 = vld [vmem:[%s3896_s2] sm:$0xff]  ;;  %vm385_vm0 = vcmask 1043456  }
  0x16   : > { %430 = vmatprep.mubr.bf16.mxu0 %v2333_v0  ;;  %483 = vmatprep.mubr.bf16.mxu1 %v2333_v0  ;;  %v345_v11 = vld [vmem:[%s3896_s2 + $0x8] sm:$0xff]  ;;  %v2159_v15 = vld [vmem:[%s3895_s1] sm:$0xff]   ;;  %vm378_vm1 = vcmask 64512   ;;  %v2334_v17 = vmov 1   ;;  %v2500_v20 = vld [vmem:[%s3897_s3 + $0x10] sm:$0xff]  ;;  %v2335_v21 = vmov 2  }
  0x17   : > { %s327_s21 = scalar_select %p326_p10, %s2419_s13, 1  ;;  %2133 = vset.pattern.permute.xlu1 %v2333_v0  ;;  %2132 = vset.pattern.permute.xlu0 %v2333_v0  ;;  %v2476_v13 = vld [vmem:[%s3897_s3 + $0x8] sm:$0xff]  ;;  %v648_v18 = vld [vmem:[%s3897_s3] sm:$0xff]  ;;  %v651_v22 = vld [vmem:[%s3897_s3 + $0x18] sm:$0xff]  ;;  %v2336_v23 = vmov 6   ;;  %v2337_v24 = vmov 7  }
  0x18   : > { %360 = vperm.xlu1 %2133, %v346_v1   ;;  %350 = vperm.xlu0 %2132, %v344_v3   ;;  %v2160_v19 = vld [vmem:[%s3895_s1 + $0x8] sm:$0xff]   ;;  %v2338_v25 = vmov 8   ;;  %v2339_v26 = vmov 3   ;;  %v2340_v27 = vmov 5   ;;  %v2341_v28 = vmov 4   ;;  %v1481_v29 = vld [vmem:[%s3898_s4] sm:$0xff] }
  0x19   : > { %s2077_s24 = sshll.u32 %s327_s21, 5  ;;  %s2342_s25 = smov 127  }
  0x1a   : > { %s2464_s16 = scalar_lea.vmem %s3894_s0, %s2077_s24  ;;  %s2343_s26 = smov 1  }
  0x1b   : > { %v333_v4 = vld [vmem:[%s2464_s16 + $0x8] sm:$0xff]  ;;  %v335_v5 = vld [vmem:[%s2464_s16 + $0x18] sm:$0xff]  ;;  %v332_v6 = vld [vmem:[%s2464_s16] sm:$0xff]  ;;  %s2345_s22 = smov 16   ;;  %s2346_s23 = smov 112  }
  0x1c   : > { %v341_v7 = vpack.c.bf16 %v333_v4, %v333_v4  ;;  %v343_v8 = vpack.c.bf16 %v335_v5, %v335_v5  ;;  %v340_v9 = vpack.c.bf16 %v332_v6, %v332_v6  ;;  %v334_v10 = vld [vmem:[%s2464_s16 + $0x10] sm:$0xff]  ;;  %365 = vperm.xlu1 %2133, %v347_v2   ;;  %355 = vperm.xlu0 %2132, %v345_v11  }
  0x1d   : > { %v342_v12 = vpack.c.bf16 %v334_v10, %v334_v10 }
  0x1e   : > { %2042 = vmatprep.subr.msk.bf16.mxu0 %vm385_vm0, %v341_v7  ;;  %2045 = vmatprep.subr.msk.bf16.mxu1 %vm385_vm0, %v343_v8  ;;  %v387_v14 = vsel %vm385_vm0, %v340_v9, 0 }
  0x1f   : > { %399 = vmatpush1.bf16.msra.mxu0 %v387_v14  ;;  %v393_v16 = vsel %vm385_vm0, %v342_v12, 0 }
  0x20   : > { %452 = vmatpush1.bf16.msra.mxu1 %v393_v16  ;;  %938 = vperm.xlu1 %2133, %v2476_v13  }
  0x21   : > { %2134 = vset.pattern.permute.xlu0 %v2334_v17 }
  0x22   : > { %2043 = vmatmul.mubr.msk.bf16.vlgmr.msra.gmra.mrb[0].mxu0 %vm378_vm1, %v2159_v15  ;;  %968 = vperm.xlu0 %2134, %v648_v18  }
  0x23   : > { %2046 = vmatmul.mubr.msk.bf16.vlgmr.msra.gmra.mrb[0].mxu1 %vm378_vm1, %v2159_v15  ;;  %440 = vmatprep.mubr.bf16.mxu0 %v2333_v0 }
  0x24   : > { %493 = vmatprep.mubr.bf16.mxu1 %v2333_v0  ;;  %2135 = vset.pattern.permute.xlu1 %v2334_v17 }
  0x25   : > { %972 = vperm.xlu1 %2135, %v2476_v13  }
  0x26   : > { %976 = vperm.xlu0 %2134, %v2500_v20  }
  0x29   : > { %2136 = vset.pattern.permute.xlu1 %v2333_v0 }
  0x2a   : > { %2044 = vmatmul.mubr.msk.bf16.gmra.mrb[4].mxu0 %vm378_vm1, %v2160_v19  ;;  %943 = vperm.xlu1 %2136, %v2500_v20  }
  0x2b   : > { %2047 = vmatmul.mubr.msk.bf16.gmra.mrb[4].mxu1 %vm378_vm1, %v2160_v19  ;;  %1901 = vmatprep.mubr.bf16.mxu0 %v2333_v0 }
  0x2c   : > { %1942 = vmatprep.mubr.bf16.mxu1 %v2333_v0  ;;  %980 = vperm.xlu0 %2134, %v651_v22  }
  0x2e   : > { %2137 = vset.pattern.permute.xlu1 %v2335_v21 }
  0x2f   : > { %1016 = vperm.xlu1 %2137, %v648_v18  }
  0x30   : > { %2141 = vset.pattern.permute.xlu0 %v2337_v24 }
  0x31   : > { %1224 = vperm.xlu0 %2141, %v648_v18  }
  0x33   : > { %2138 = vset.pattern.permute.xlu1 %v2336_v23 }
  0x34   : > { %1192 = vperm.xlu1 %2138, %v648_v18  }
  0x35   : > { %1232 = vperm.xlu0 %2141, %v2500_v20  }
  0x38   : > { %1196 = vperm.xlu1 %2138, %v2476_v13  }
  0x39   : > { %2144 = vset.pattern.permute.xlu0 %v2335_v21 }
  0x3a   : > { %1020 = vperm.xlu0 %2144, %v2476_v13  }
  0x3c   : > { %2139 = vset.pattern.permute.xlu1 %v2337_v24 }
  0x3d   : > { %1228 = vperm.xlu1 %2139, %v2476_v13  }
  0x3e   : > { %1028 = vperm.xlu0 %2144, %v651_v22  }
  0x41   : > { %2140 = vset.pattern.permute.xlu1 %v2333_v0 }
  0x42   : > { %948 = vperm.xlu1 %2140, %v651_v22   ;;  %2148 = vset.pattern.permute.xlu0 %v2338_v25 }
  0x43   : > { %1280 = vperm.xlu0 %2148, %v2500_v20  }
  0x46   : > { %2142 = vset.pattern.permute.xlu1 %v2335_v21 }
  0x47   : > { %1024 = vperm.xlu1 %2142, %v2500_v20   ;;  %1284 = vperm.xlu0 %2148, %v651_v22  }
  0x4b   : > { %2143 = vset.pattern.permute.xlu1 %v2336_v23  ;;  %2150 = vset.pattern.permute.xlu0 %v2339_v26 }
  0x4c   : > { %1200 = vperm.xlu1 %2143, %v2500_v20   ;;  %1068 = vperm.xlu0 %2150, %v2476_v13  }
  0x50   : > { %2145 = vset.pattern.permute.xlu1 %v2338_v25  ;;  %1072 = vperm.xlu0 %2150, %v2500_v20  }
  0x51   : > { %1272 = vperm.xlu1 %2145, %v648_v18  }
  0x54   : > { %2152 = vset.pattern.permute.xlu0 %v2340_v27 }
  0x55   : > { %1276 = vperm.xlu1 %2145, %v2476_v13   ;;  %1144 = vperm.xlu0 %2152, %v648_v18  }
  0x59   : > { %2146 = vset.pattern.permute.xlu1 %v2336_v23  ;;  %2155 = vset.pattern.permute.xlu0 %v2341_v28 }
  0x5a   : > { %1204 = vperm.xlu1 %2146, %v651_v22   ;;  %1108 = vperm.xlu0 %2155, %v651_v22  }
  0x5e   : > { %2147 = vset.pattern.permute.xlu1 %v2337_v24  ;;  %2156 = vset.pattern.permute.xlu0 %v2333_v0 }
  0x5f   : > { %1236 = vperm.xlu1 %2147, %v651_v22   ;;  %933 = vperm.xlu0 %2156, %v648_v18  }
  0x63   : > { %2149 = vset.pattern.permute.xlu1 %v2339_v26  ;;  %1487 = vperm.xlu0 %2156, %v1481_v29  }
  0x64   : > { %1064 = vperm.xlu1 %2149, %v648_v18  }
  0x68   : > { %2151 = vset.pattern.permute.xlu1 %v2341_v28 }
  0x69   : > { %1096 = vperm.xlu1 %2151, %v648_v18  }
  0x6d   : > { %1100 = vperm.xlu1 %2151, %v2476_v13  }
  0x71   : > { %1104 = vperm.xlu1 %2151, %v2500_v20  }
  0x75   : > { %2153 = vset.pattern.permute.xlu1 %v2340_v27 }
  0x76   : > { %1148 = vperm.xlu1 %2153, %v2476_v13  }
  0x7a   : > { %2154 = vset.pattern.permute.xlu1 %v2339_v26 }
  0x7b   : > { %1076 = vperm.xlu1 %2154, %v651_v22  }
  0x7f   : > { %2157 = vset.pattern.permute.xlu1 %v2340_v27 }
  0x80   : > { %1152 = vperm.xlu1 %2157, %v2500_v20  }
  0x84   : > { %1156 = vperm.xlu1 %2157, %v651_v22  }
  0x88   : > { %2158 = vset.pattern.permute.xlu1 %v2333_v0 }
  0x97   : > { %v2532_v30 = vpop.permute.xlu1 %360  ;;  %v351_v42 = vpop.permute.xlu0 %350 }
  0x9b   : > { %v2534_v31 = vpop.permute.xlu1 %365  ;;  %v356_v44 = vpop.permute.xlu0 %355 }
  0x9f   : > { %v2536_v32 = vpop.permute.xlu1 %938 }
  0xa4   : > { %v2538_v33 = vpop.permute.xlu1 %972 }
  0xa9   : > { %v2540_v34 = vpop.permute.xlu1 %943 }
  0xaa   : > { %3930 = vst [vmem:[#allocation5_spill] sm:$0xff] %v2540_v34 }
  0xae   : > { %v2542_v35 = vpop.permute.xlu1 %1016 }
  0xb3   : > { %v2544_v36 = vpop.permute.xlu1 %1192 }
  0xb7   : > { %v2546_v37 = vpop.permute.xlu1 %1196 }
  0xbc   : > { %v2548_v38 = vpop.permute.xlu1 %1228 }
  0xc1   : > { %v2550_v39 = vpop.permute.xlu1 %948 }
  0xc2   : > { %3931 = vst [vmem:[#allocation6_spill] sm:$0xff] %v2550_v39 }
  0xc6   : > { %v2552_v40 = vpop.permute.xlu1 %1024 }
  0xc7   : > { %3932 = vst [vmem:[#allocation7_spill] sm:$0xff] %v2552_v40 }
  0xcb   : > { %v2554_v41 = vpop.permute.xlu1 %1200 }
  0xcc   : > { %3933 = vst [vmem:[#allocation8_spill] sm:$0xff] %v2554_v41 }
  0xd0   : > { %v2556_v43 = vpop.permute.xlu1 %1272 }
  0xd4   : > { %v2558_v46 = vpop.permute.xlu1 %1276 }
  0xd5   : > { %3934 = vst [vmem:[#allocation9_spill] sm:$0xff] %v2558_v46 }
  0xd9   : > { %v2599_v17 = vpop.permute.xlu1 %1204 }
  0xda   : > { %3935 = vst [vmem:[#allocation10_spill] sm:$0xff] %v2599_v17 }
  0xf5   : > { %v432_v45 = vpop.f32.mrb[0].mxu0 }
  0xf6   : > { %v2560_v47 = vadd.f32 %v432_v45, %v351_v42  ;;  %v485_v48 = vpop.f32.mrb[0].mxu1  ;;  %v434_v49 = vpop.f32.mrb[1].mxu0 }
  0xf7   : > { %v2562_v50 = vadd.f32 %v485_v48, %v351_v42  ;;  %v2564_v51 = vadd.f32 %v434_v49, %v351_v42  ;;  %v487_v52 = vpop.f32.mrb[1].mxu1  ;;  %v436_v53 = vpop.f32.mrb[2].mxu0 }
  0xf8   : > { %v504_v54 = vmul.f32 %v2560_v47, %v2560_v47  ;;  %v2568_v55 = vadd.f32 %v487_v52, %v351_v42  ;;  %v2570_v56 = vadd.f32 %v436_v53, %v356_v44  ;;  %v489_v57 = vpop.f32.mrb[2].mxu1  ;;  %v438_v58 = vpop.f32.mrb[3].mxu0 }
  0xf9   : > { %v506_v59 = vmul.f32 %v2562_v50, %v2562_v50  ;;  %v505_v60 = vmul.f32 %v2564_v51, %v2564_v51  ;;  %v2576_v61 = vadd.f32 %v489_v57, %v356_v44  ;;  %v2578_v62 = vadd.f32 %v438_v58, %v356_v44  ;;  %v491_v63 = vpop.f32.mrb[3].mxu1 }
  0xfa   : > { %v520_v0 = vmul.f32 %v504_v54, %v2560_v47  ;;  %v507_v1 = vmul.f32 %v2568_v55, %v2568_v55  ;;  %v508_v2 = vmul.f32 %v2570_v56, %v2570_v56  ;;  %v2585_v3 = vadd.f32 %v491_v63, %v356_v44 }
  0xfb   : > { %v522_v4 = vmul.f32 %v506_v59, %v2562_v50  ;;  %v521_v5 = vmul.f32 %v505_v60, %v2564_v51  ;;  %v510_v6 = vmul.f32 %v2576_v61, %v2576_v61  ;;  %v509_v7 = vmul.f32 %v2578_v62, %v2578_v62 }
  0xfc   : > { %v536_v8 = vmul.f32 0.044715, %v520_v0  ;;  %v523_v9 = vmul.f32 %v507_v1, %v2568_v55  ;;  %v524_v10 = vmul.f32 %v508_v2, %v2570_v56  ;;  %v511_v11 = vmul.f32 %v2585_v3, %v2585_v3 }
  0xfd   : > { %v538_v12 = vmul.f32 0.044715, %v522_v4  ;;  %v537_v13 = vmul.f32 0.044715, %v521_v5  ;;  %v526_v14 = vmul.f32 %v510_v6, %v2576_v61  ;;  %v525_v15 = vmul.f32 %v509_v7, %v2578_v62  ;;  %v442_v16 = vpop.f32.mrb[4].mxu0  ;;  %v2621_v4 = vpop.permute.xlu1 %1236 }
  0xfe   : > { %v552_v18 = vadd.f32 %v536_v8, %v2560_v47  ;;  %v539_v19 = vmul.f32 0.044715, %v523_v9  ;;  %v540_v20 = vmul.f32 0.044715, %v524_v10  ;;  %v527_v21 = vmul.f32 %v511_v11, %v2585_v3  ;;  %v495_v22 = vpop.f32.mrb[4].mxu1  ;;  %v444_v23 = vpop.f32.mrb[5].mxu0 }
  0xff   : > { %v554_v24 = vadd.f32 %v538_v12, %v2562_v50  ;;  %v553_v25 = vadd.f32 %v537_v13, %v2564_v51  ;;  %v542_v26 = vmul.f32 0.044715, %v526_v14  ;;  %v541_v27 = vmul.f32 0.044715, %v525_v15  ;;  %v497_v28 = vpop.f32.mrb[5].mxu1  ;;  %v2605_v29 = vpop.f32.mrb[6].mxu0 }
 0x100   : > { %v568_v42 = vmul.f32 0.7978846, %v552_v18  ;;  %v555_v44 = vadd.f32 %v539_v19, %v2568_v55  ;;  %v556_v45 = vadd.f32 %v540_v20, %v2570_v56  ;;  %v543_v48 = vmul.f32 0.044715, %v527_v21  ;;  %v2609_v49 = vpop.f32.mrb[6].mxu1  ;;  %v2611_v52 = vpop.f32.mrb[7].mxu0 }
 0x101   : > { %v570_v53 = vmul.f32 0.7978846, %v554_v24  ;;  %v569_v54 = vmul.f32 0.7978846, %v553_v25  ;;  %v558_v57 = vadd.f32 %v542_v26, %v2576_v61  ;;  %v557_v58 = vadd.f32 %v541_v27, %v2578_v62  ;;  %v2615_v59 = vpop.f32.mrb[7].mxu1  ;;  %3936 = vst [vmem:[#allocation11_spill] sm:$0xff] %v2621_v4  ;;  %v2644_v19 = vpop.permute.xlu1 %1064 }
 0x102   : > { %2161 = vtanh.f32 %v568_v42  ;;  %v571_v60 = vmul.f32 0.7978846, %v555_v44  ;;  %v572_v63 = vmul.f32 0.7978846, %v556_v45  ;;  %v559_v0 = vadd.f32 %v543_v48, %v2585_v3 }
 0x103   : > { %2163 = vtanh.f32 %v570_v53  ;;  %v574_v1 = vmul.f32 0.7978846, %v558_v57  ;;  %v2619_v2 = vadd.f32 %v442_v16, %v2532_v30  ;;  %v573_v5 = vmul.f32 0.7978846, %v557_v58 }
 0x104   : > { %2165 = vtanh.f32 %v569_v54  ;;  %v2624_v6 = vadd.f32 %v495_v22, %v2532_v30  ;;  %v2627_v7 = vadd.f32 %v444_v23, %v2532_v30  ;;  %v575_v8 = vmul.f32 0.7978846, %v559_v0 }
 0x105   : > { %2167 = vtanh.f32 %v571_v60  ;;  %v512_v9 = vmul.f32 %v2619_v2, %v2619_v2  ;;  %v2632_v10 = vadd.f32 %v497_v28, %v2532_v30 }
 0x106   : > { %2169 = vtanh.f32 %v572_v63  ;;  %v514_v11 = vmul.f32 %v2624_v6, %v2624_v6  ;;  %v513_v12 = vmul.f32 %v2627_v7, %v2627_v7  ;;  %v2650_v63 = vpop.permute.xlu1 %1096 }
 0x107   : > { %2171 = vtanh.f32 %v574_v1  ;;  %v528_v13 = vmul.f32 %v512_v9, %v2619_v2  ;;  %v515_v14 = vmul.f32 %v2632_v10, %v2632_v10 }
 0x108   : > { %2173 = vtanh.f32 %v573_v5  ;;  %v530_v15 = vmul.f32 %v514_v11, %v2624_v6  ;;  %v529_v16 = vmul.f32 %v513_v12, %v2627_v7 }
 0x109   : > { %2175 = vtanh.f32 %v575_v8  ;;  %v544_v30 = vmul.f32 0.044715, %v528_v13  ;;  %v531_v18 = vmul.f32 %v515_v14, %v2632_v10 }
 0x10a   : > { %v546_v20 = vmul.f32 0.044715, %v530_v15  ;;  %v545_v21 = vmul.f32 0.044715, %v529_v16 }
 0x10b   : > { %v560_v22 = vadd.f32 %v544_v30, %v2619_v2  ;;  %v547_v23 = vmul.f32 0.044715, %v531_v18  ;;  %v2657_v30 = vadd.f32 %v2605_v29, %v2534_v31  ;;  %v2661_v18 = vadd.f32 %v2609_v49, %v2534_v31 }
 0x10c   : > { %v2162_v24 = vpop.eup %2161  ;;  %v562_v25 = vadd.f32 %v546_v20, %v2624_v6  ;;  %v561_v26 = vadd.f32 %v545_v21, %v2627_v7 }
 0x10d   : > { %v2164_v27 = vpop.eup %2163  ;;  %v600_v28 = vadd.f32 1.0, %v2162_v24  ;;  %v576_v42 = vmul.f32 0.7978846, %v560_v22  ;;  %v563_v44 = vadd.f32 %v547_v23, %v2632_v10  ;;  %v1101_v24 = vpop.permute.xlu1 %1100 }
 0x10e   : > { %v2166_v45 = vpop.eup %2165  ;;  %v602_v48 = vadd.f32 1.0, %v2164_v27  ;;  %v578_v53 = vmul.f32 0.7978846, %v562_v25  ;;  %v577_v54 = vmul.f32 0.7978846, %v561_v26 }
 0x10f   : > { %v2168_v57 = vpop.eup %2167  ;;  %v616_v58 = vmul.f32 0.5, %v600_v28  ;;  %2177 = vtanh.f32 %v576_v42  ;;  %v579_v60 = vmul.f32 0.7978846, %v563_v44  ;;  %v601_v1 = vadd.f32 1.0, %v2166_v45 }
 0x110   : > { %v2170_v0 = vpop.eup %2169  ;;  %2179 = vtanh.f32 %v578_v53  ;;  %v618_v9 = vmul.f32 0.5, %v602_v48  ;;  %v516_v28 = vmul.f32 %v2657_v30, %v2657_v30 }
 0x111   : > { %v2172_v5 = vpop.eup %2171  ;;  %v2653_v8 = vmul.f32 %v616_v58, %v2560_v47  ;;  %v604_v11 = vadd.f32 1.0, %v2170_v0  ;;  %2181 = vtanh.f32 %v577_v54  ;;  %v603_v47 = vadd.f32 1.0, %v2168_v57 }
 0x112   : > { %v2174_v12 = vpop.eup %2173  ;;  %v606_v13 = vadd.f32 1.0, %v2172_v5  ;;  %2183 = vtanh.f32 %v579_v60  ;;  %v2668_v22 = vmul.f32 %v618_v9, %v2562_v50  ;;  %v617_v29 = vmul.f32 0.5, %v601_v1 }
 0x113   : > { %v2176_v14 = vpop.eup %2175  ;;  %v620_v15 = vmul.f32 0.5, %v604_v11  ;;  %v605_v16 = vadd.f32 1.0, %v2174_v12  ;;  %866 = vrot.lane.b32.xlu0 %v2653_v8, %s2342_s25  ;;  %801 = vrot.lane.b32.xlu1 %v2653_v8, %s2343_s26  ;;  %v518_v50 = vmul.f32 %v2661_v18, %v2661_v18  ;;  %v619_v45 = vmul.f32 0.5, %v603_v47 }
 0x114   : > { %v622_v20 = vmul.f32 0.5, %v606_v13  ;;  %v607_v21 = vadd.f32 1.0, %v2176_v14  ;;  %v2698_v44 = vmul.f32 %v617_v29, %v2564_v51  ;;  %v532_v60 = vmul.f32 %v516_v28, %v2657_v30 }
 0x115   : > { %v2671_v23 = vmul.f32 %v620_v15, %v2570_v56  ;;  %v621_v49 = vmul.f32 0.5, %v605_v16  ;;  %v534_v0 = vmul.f32 %v518_v50, %v2661_v18  ;;  %v2719_v11 = vadd.f32 %v2615_v59, %v2534_v31  ;;  %v1105_v15 = vpop.permute.xlu1 %1104 }
 0x116   : > { %v2674_v25 = vmul.f32 %v622_v20, %v2576_v61  ;;  %v623_v26 = vmul.f32 0.5, %v607_v21  ;;  %v2692_v61 = vadd.f32 %v2611_v52, %v2534_v31  ;;  %v2722_v12 = vmul.f32 %v619_v45, %v2568_v55 }
 0x117   : > { %v2677_v27 = vmul.f32 %v621_v49, %v2578_v62  ;;  %882 = vrot.lane.b32.xlu0 %v2668_v22, %s2342_s25  ;;  %817 = vrot.lane.b32.xlu1 %v2668_v22, %s2343_s26  ;;  %v2695_v62 = vmul.f32 %v1101_v24, %v2671_v23  ;;  %v548_v29 = vmul.f32 0.044715, %v532_v60  ;;  %v550_v49 = vmul.f32 0.044715, %v534_v0  ;;  %v2772_v0 = vpop.permute.xlu0 %968 }
 0x118   : > { %v2688_v56 = vmul.f32 %v623_v26, %v2585_v3  ;;  %v2704_v53 = vmul.f32 %v1101_v24, %v2674_v25  ;;  %v517_v9 = vmul.f32 %v2692_v61, %v2692_v61  ;;  %v519_v59 = vmul.f32 %v2719_v11, %v2719_v11 }
 0x119   : > { %3937 = vst [vmem:[#allocation12_spill] sm:$0xff] %v2695_v62  ;;  %v2178_v42 = vpop.eup %2177  ;;  %v2701_v48 = vmul.f32 %v1101_v24, %v2677_v27  ;;  %v2898_v39 = vmul.f32 %v2650_v63, %v2722_v12 }
 0x11a   : > { %3939 = vst [vmem:[#allocation14_spill] sm:$0xff] %v2704_v53  ;;  %v2180_v3 = vpop.eup %2179  ;;  %v608_v54 = vadd.f32 1.0, %v2178_v42  ;;  %v2707_v57 = vmul.f32 %v1101_v24, %v2688_v56  ;;  %v533_v55 = vmul.f32 %v517_v9, %v2692_v61  ;;  %v535_v42 = vmul.f32 %v519_v59, %v2719_v11 }
 0x11b   : > { %3938 = vst [vmem:[#allocation13_spill] sm:$0xff] %v2701_v48  ;;  %v2182_v52 = vpop.eup %2181  ;;  %v610_v58 = vadd.f32 1.0, %v2180_v3  ;;  %874 = vrot.lane.b32.xlu0 %v2698_v44, %s2342_s25  ;;  %809 = vrot.lane.b32.xlu1 %v2698_v44, %s2343_s26  ;;  %3959 = vst [vmem:[#allocation34_spill] sm:$0xff] %v2898_v39  ;;  %v3920_v53 = vmov 0.0   ;;  %v2964_v40 = vmul.f32 %v2538_v33, %v2688_v56 }
 0x11c   : > { %3940 = vst [vmem:[#allocation15_spill] sm:$0xff] %v2707_v57  ;;  %v2184_v51 = vpop.eup %2183  ;;  %v624_v1 = vmul.f32 0.5, %v608_v54  ;;  %v609_v5 = vadd.f32 1.0, %v2182_v52  ;;  %v549_v50 = vmul.f32 0.044715, %v533_v55 }
 0x11d   : > { %v626_v13 = vmul.f32 0.5, %v610_v58  ;;  %v611_v14 = vadd.f32 1.0, %v2184_v51  ;;  %v551_v52 = vmul.f32 0.044715, %v535_v42  ;;  %3965 = vst [vmem:[#allocation40_spill] sm:$0xff] %v2964_v40  ;;  %v2986_v40 = vmul.f32 %v2772_v0, %v2722_v12 }
 0x11e   : > { %v2725_v16 = vmul.f32 %v624_v1, %v2619_v2  ;;  %v625_v47 = vmul.f32 0.5, %v609_v5  ;;  %v565_v54 = vadd.f32 %v549_v50, %v2692_v61  ;;  %v2782_v5 = vpop.permute.xlu0 %976 }
 0x11f   : > { %v2728_v20 = vmul.f32 %v626_v13, %v2624_v6  ;;  %v627_v21 = vmul.f32 0.5, %v611_v14  ;;  %890 = vrot.lane.b32.xlu0 %v2722_v12, %s2342_s25  ;;  %825 = vrot.lane.b32.xlu1 %v2722_v12, %s2343_s26  ;;  %v567_v60 = vadd.f32 %v551_v52, %v2719_v11 }
 0x120   : > { %v2735_v31 = vmul.f32 %v625_v47, %v2627_v7  ;;  %v2741_v2 = vmul.f32 %v1105_v15, %v2725_v16  ;;  %v564_v7 = vadd.f32 %v548_v29, %v2657_v30  ;;  %v581_v58 = vmul.f32 0.7978846, %v565_v54 }
 0x121   : > { %v2744_v6 = vmul.f32 %v627_v21, %v2632_v10  ;;  %v2747_v24 = vmul.f32 %v1105_v15, %v2728_v20  ;;  %v566_v10 = vadd.f32 %v550_v49, %v2661_v18  ;;  %v583_v51 = vmul.f32 0.7978846, %v567_v60 }
 0x122   : > { %3941 = vst [vmem:[#allocation16_spill] sm:$0xff] %v2741_v2  ;;  %v2750_v26 = vmul.f32 %v1105_v15, %v2735_v31  ;;  %v580_v45 = vmul.f32 0.7978846, %v564_v7  ;;  %v2788_v47 = vpop.permute.xlu0 %980  ;;  %v2990_v46 = vmul.f32 %v2782_v5, %v2728_v20 }
 0x123   : > { %3942 = vst [vmem:[#allocation17_spill] sm:$0xff] %v2747_v24  ;;  %v2754_v28 = vmul.f32 %v1105_v15, %v2744_v6  ;;  %803 = vrot.lane.b32.xlu0 %v2671_v23, %s2343_s26  ;;  %868 = vrot.lane.b32.xlu1 %v2671_v23, %s2342_s25  ;;  %v582_v3 = vmul.f32 0.7978846, %v566_v10 }
 0x124   : > { %3943 = vst [vmem:[#allocation18_spill] sm:$0xff] %v2750_v26  ;;  %2185 = vtanh.f32 %v580_v45  ;;  %3967 = vst [vmem:[#allocation42_spill] sm:$0xff] %v2990_v46 }
 0x125   : > { %3944 = vst [vmem:[#allocation19_spill] sm:$0xff] %v2754_v28  ;;  %2187 = vtanh.f32 %v582_v3 }
 0x126   : > { %2189 = vtanh.f32 %v581_v58  ;;  %v2798_v59 = vpop.permute.xlu0 %1224  ;;  %v1483_v58 = vld [vmem:[%s3898_s4 + $0x10] sm:$0xff] }
 0x127   : > { %819 = vrot.lane.b32.xlu0 %v2674_v25, %s2343_s26  ;;  %884 = vrot.lane.b32.xlu1 %v2674_v25, %s2342_s25  ;;  %2191 = vtanh.f32 %v583_v51 }
 0x12a   : > { %v2813_v54 = vpop.permute.xlu0 %1232 }
 0x12b   : > { %811 = vrot.lane.b32.xlu0 %v2677_v27, %s2343_s26  ;;  %876 = vrot.lane.b32.xlu1 %v2677_v27, %s2342_s25  ;;  %v2978_v41 = vmul.f32 %v2813_v54, %v2735_v31 }
 0x12d   : > { %3966 = vst [vmem:[#allocation41_spill] sm:$0xff] %v2978_v41 }
 0x12e   : > { %v2186_v1 = vpop.eup %2185 }
 0x12f   : > { %827 = vrot.lane.b32.xlu0 %v2688_v56, %s2343_s26  ;;  %892 = vrot.lane.b32.xlu1 %v2688_v56, %s2342_s25  ;;  %v2188_v9 = vpop.eup %2187  ;;  %v612_v13 = vadd.f32 1.0, %v2186_v1 }
 0x130   : > { %v614_v14 = vadd.f32 1.0, %v2188_v9  ;;  %v2190_v15 = vpop.eup %2189 }
 0x131   : > { %v628_v21 = vmul.f32 0.5, %v612_v13  ;;  %v613_v49 = vadd.f32 1.0, %v2190_v15  ;;  %v2192_v55 = vpop.eup %2191  ;;  %v2851_v13 = vpop.permute.xlu1 %1148 }
 0x132   : > { %v630_v29 = vmul.f32 0.5, %v614_v14  ;;  %v615_v42 = vadd.f32 1.0, %v2192_v55  ;;  %3951 = vst [vmem:[#allocation26_spill] sm:$0xff] %v2851_v13  ;;  %v2998_v13 = vmul.f32 %v2813_v54, %v2744_v6 }
 0x133   : > { %805 = vrot.lane.b32.xlu0 %v2725_v16, %s2343_s26  ;;  %813 = vrot.lane.b32.xlu1 %v2735_v31, %s2343_s26  ;;  %v2801_v7 = vmul.f32 %v628_v21, %v2657_v30  ;;  %v629_v50 = vmul.f32 0.5, %v613_v49  ;;  %v652_v21 = vlaneseq }
 0x134   : > { %v2804_v10 = vmul.f32 %v630_v29, %v2661_v18  ;;  %v631_v3 = vmul.f32 0.5, %v615_v42  ;;  %v1484_v18 = vld [vmem:[%s3898_s4 + $0x18] sm:$0xff]  ;;  %3969 = vst [vmem:[#allocation44_spill] sm:$0xff] %v2998_v13  ;;  %v3016_v13 = vmul.f32 %v2548_v38, %v2671_v23 }
 0x135   : > { %v2811_v45 = vmul.f32 %v629_v50, %v2692_v61  ;;  %v2829_v61 = vpop.permute.xlu0 %1020  ;;  %v2855_v15 = vpop.permute.xlu1 %1076  ;;  %v2859_v49 = vand.u32 127, %v652_v21 }
 0x136   : > { %v2820_v30 = vmul.f32 %v631_v3, %v2719_v11  ;;  %3946 = vst [vmem:[#allocation21_spill] sm:$0xff] %v2829_v61  ;;  %v1482_v11 = vld [vmem:[%s3898_s4 + $0x8] sm:$0xff]  ;;  %3952 = vst [vmem:[#allocation27_spill] sm:$0xff] %v2855_v15  ;;  %v2893_v15 = vmul.f32 %v2650_v63, %v2668_v22  ;;  %v2931_v57 = vmul.f32 %v2621_v4, %v2804_v10 }
 0x137   : > { %821 = vrot.lane.b32.xlu0 %v2728_v20, %s2343_s26  ;;  %829 = vrot.lane.b32.xlu1 %v2744_v6, %s2343_s26  ;;  %v2866_v42 = vadd.s32 128, %v2859_v49  ;;  %v2875_v24 = vadd.s32 256, %v2859_v49  ;;  %v2878_v21 = vadd.s32 384, %v2859_v49  ;;  %vm898_vm5 = vcmp.lt.s32.totalorder %v2859_v49, 127  ;;  %3972 = vst [vmem:[#allocation47_spill] sm:$0xff] %v3016_v13 }
 0x138   : > { %3945 = vst [vmem:[#allocation20_spill] sm:$0xff] %v2820_v30  ;;  %vm833_vm9 = vcmp.lt.s32.totalorder %v2859_v49, 1  ;;  %3962 = vst [vmem:[#allocation37_spill] sm:$0xff] %v2931_v57  ;;  %v3024_v61 = vmul.f32 %v2548_v38, %v2677_v27  ;;  %v3099_v13 = vmul.f32 %v2788_v47, %v2801_v7  ;;  %vm1351_vm13 = vcmp.lt.s32.totalorder %v2859_v49, 16 }
 0x139   : > { %v2833_v52 = vpop.permute.xlu0 %1028  ;;  %v2861_v55 = vpop.permute.xlu1 %1152  ;;  %3954 = vst [vmem:[#allocation29_spill] sm:$0xff] %v2866_v42  ;;  %3957 = vst [vmem:[#allocation32_spill] sm:$0xff] %v2875_v24  ;;  %v675_v17 = vand.u32 15, %v2875_v24  ;;  %v2902_v24 = vmul.f32 %v2798_v59, %v2653_v8  ;;  %vm1432_vm0 = vcmp.lt.s32.totalorder %v2859_v49, 112 }
 0x13a   : > { %3947 = vst [vmem:[#allocation22_spill] sm:$0xff] %v2833_v52  ;;  %3953 = vst [vmem:[#allocation28_spill] sm:$0xff] %v2861_v55  ;;  %v682_v52 = vand.u32 15, %v2878_v21 }
 0x13b   : > { %870 = vrot.lane.b32.xlu0 %v2725_v16, %s2342_s25  ;;  %878 = vrot.lane.b32.xlu1 %v2735_v31, %s2342_s25  ;;  %3958 = vst [vmem:[#allocation33_spill] sm:$0xff] %v2878_v21  ;;  %vm755_vm6 = vcmp.ge.s32.totalorder %v675_v17, 1  ;;  %vm767_vm7 = vcmp.le.s32.totalorder %v675_v17, 14  ;;  %v2943_v17 = vmul.f32 %v2798_v59, %v2698_v44  ;;  %3974 = vst [vmem:[#allocation49_spill] sm:$0xff] %v3024_v61 }
 0x13c   : > { %vm768_vm10 = vcmp.le.s32.totalorder %v682_v52, 14  ;;  %vm756_vm11 = vcmp.ge.s32.totalorder %v682_v52, 1  ;;  %v2946_v48 = vsel %vm755_vm6, 1.0, %v3920_v53  ;;  %v2949_v39 = vsel %vm767_vm7, 1.0, %v3920_v53 }
 0x13d   : > { %v2843_v60 = vpop.permute.xlu0 %1280  ;;  %v2868_v3 = vpop.permute.xlu1 %1156  ;;  %v2957_v55 = vsel %vm768_vm10, 1.0, %v3920_v53 }
 0x13e   : > { %3948 = vst [vmem:[#allocation23_spill] sm:$0xff] %v2843_v60  ;;  %3955 = vst [vmem:[#allocation30_spill] sm:$0xff] %v2868_v3  ;;  %v2910_v3 = vmul.f32 %v2621_v4, %v2801_v7  ;;  %v2960_v60 = vsel %vm756_vm11, 1.0, %v3920_v53 }
 0x13f   : > { %886 = vrot.lane.b32.xlu0 %v2728_v20, %s2342_s25  ;;  %894 = vrot.lane.b32.xlu1 %v2744_v6, %s2342_s25 }
 0x140   : > { %3960 = vst [vmem:[#allocation35_spill] sm:$0xff] %v2910_v3 }
 0x141   : > { %v2845_v51 = vpop.permute.xlu0 %1284 }
 0x142   : > { %3949 = vst [vmem:[#allocation24_spill] sm:$0xff] %v2845_v51  ;;  %v2906_v51 = vmul.f32 %v2772_v0, %v2653_v8 }
 0x143   : > { %823 = vrot.lane.b32.xlu0 %v2804_v10, %s2343_s26  ;;  %807 = vrot.lane.b32.xlu1 %v2801_v7, %s2343_s26 }
 0x145   : > { %v2847_v1 = vpop.permute.xlu0 %1068 }
 0x147   : > { %880 = vrot.lane.b32.xlu0 %v2811_v45, %s2342_s25  ;;  %872 = vrot.lane.b32.xlu1 %v2801_v7, %s2342_s25 }
 0x149   : > { %v2849_v9 = vpop.permute.xlu0 %1072 }
 0x14a   : > { %3950 = vst [vmem:[#allocation25_spill] sm:$0xff] %v2849_v9  ;;  %v2968_v9 = vmul.f32 %v2798_v59, %v2668_v22 }
 0x14b   : > { %896 = vrot.lane.b32.xlu0 %v2820_v30, %s2342_s25  ;;  %888 = vrot.lane.b32.xlu1 %v2804_v10, %s2342_s25  ;;  %s2078_s25 = sshll.u32 %s2419_s13, 9 }
 0x14c   : > { %s3850_s29 = scalar_lea.hbm %s3903_s9, %s2078_s25 }
 0x14d   : > { %v2853_v14 = vpop.permute.xlu0 %1144 }
 0x14f   : > { %1502 = vperm.xlu0 %2156, %v1484_v18   ;;  %815 = vrot.lane.b32.xlu1 %v2811_v45, %s2343_s26 }
 0x151   : > { %v2857_v29 = vpop.permute.xlu0 %1108 }
 0x152   : > { %v2935_v62 = vmul.f32 %v2857_v29, %v2804_v10 }
 0x153   : > { %831 = vrot.lane.b32.xlu1 %v2820_v30, %s2343_s26 }
 0x154   : > { %3963 = vst [vmem:[#allocation38_spill] sm:$0xff] %v2935_v62  ;;  %v984_v62 = vmul.f32 %v2772_v0, %v2698_v44 }
 0x155   : > { %v2863_v50 = vpop.permute.xlu0 %933 }
 0x157   : > { %1492 = vperm.xlu1 %2158, %v1482_v11   ;;  %v661_v11 = vand.u32 15, %v2859_v49 }
 0x159   : > { %v2870_v18 = vpop.permute.xlu0 %1487  ;;  %vm765_vm2 = vcmp.le.s32.totalorder %v661_v11, 14  ;;  %vm753_vm8 = vcmp.ge.s32.totalorder %v661_v11, 1 }
 0x15a   : > { %3956 = vst [vmem:[#allocation31_spill] sm:$0xff] %v2870_v18  ;;  %v2885_v18 = vmul.f32 %v2650_v63, %v2653_v8  ;;  %v2923_v8 = vmul.f32 %v2857_v29, %v2801_v7  ;;  %v2952_v57 = vsel %vm753_vm8, 1.0, %v3920_v53 }
 0x15b   : > { %1497 = vperm.xlu1 %2158, %v1483_v58   ;;  %v668_v58 = vand.u32 15, %v2866_v42  ;;  %v2889_v42 = vmul.f32 %v2650_v63, %v2698_v44  ;;  %v2915_v63 = vsel %vm765_vm2, 1.0, %v3920_v53  ;;  %v2974_v44 = vmul.f32 %v2772_v0, %v2668_v22 }
 0x15c   : > { %3961 = vst [vmem:[#allocation36_spill] sm:$0xff] %v2923_v8  ;;  %v2939_v8 = vmul.f32 %v2538_v33, %v2674_v25  ;;  %v2994_v22 = vmul.f32 %v2782_v5, %v2725_v16 }
 0x15d   : > { %vm766_vm3 = vcmp.le.s32.totalorder %v668_v58, 14  ;;  %vm754_vm4 = vcmp.ge.s32.totalorder %v668_v58, 1 }
 0x15e   : > { %v2918_v58 = vsel %vm766_vm3, 1.0, %v3920_v53  ;;  %v2926_v3 = vsel %vm754_vm4, 1.0, %v3920_v53  ;;  %3964 = vst [vmem:[#allocation39_spill] sm:$0xff] %v2939_v8  ;;  %v2982_v53 = vmul.f32 %v2798_v59, %v2722_v12  ;;  %3968 = vst [vmem:[#allocation43_spill] sm:$0xff] %v2994_v22  ;;  %v3002_v59 = vmul.f32 %v2857_v29, %v2811_v45 }
 0x15f   : > { %v3011_v22 = vmul.f32 %v2538_v33, %v2671_v23  ;;  %v3038_v23 = vmul.f32 %v2548_v38, %v2688_v56  ;;  %v3060_v56 = vmul.f32 %v2788_v47, %v2811_v45 }
 0x160   : > { %3970 = vst [vmem:[#allocation45_spill] sm:$0xff] %v3002_v59  ;;  %v3020_v59 = vmul.f32 %v2538_v33, %v2677_v27 }
 0x161   : > { %3971 = vst [vmem:[#allocation46_spill] sm:$0xff] %v3011_v22  ;;  %3977 = vst [vmem:[#allocation52_spill] sm:$0xff] %v3038_v23 }
 0x162   : > { %3973 = vst [vmem:[#allocation48_spill] sm:$0xff] %v3020_v59  ;;  %3980 = vst [vmem:[#allocation55_spill] sm:$0xff] %v3060_v56 }
 0x185   : > { %v2880_v2 = vpop.permute.xlu0 %866  ;;  %v802_v28 = vpop.permute.xlu1 %801 }
 0x189   : > { %v2912_v26 = vpop.permute.xlu0 %882  ;;  %v818_v21 = vpop.permute.xlu1 %817 }
 0x18d   : > { %v875_v11 = vpop.permute.xlu0 %874  ;;  %v810_v52 = vpop.permute.xlu1 %809 }
 0x18e   : > { %v842_v34 = vsel %vm833_vm9, %v802_v28, %v810_v52  ;;  %v907_v12 = vsel %vm898_vm5, %v2880_v2, %v875_v11  ;;  %v838_v0 = vsel %vm833_vm9, %v810_v52, %v818_v21  ;;  %v3028_v52 = vmul.f32 %v2857_v29, %v2820_v30 }
 0x18f   : > { %v851_v8 = vmul.f32 %v2926_v3, %v842_v34  ;;  %v3034_v34 = vmul.f32 %v2548_v38, %v2674_v25  ;;  %v903_v33 = vsel %vm898_vm5, %v875_v11, %v2912_v26  ;;  %v915_v27 = vmul.f32 %v2915_v63, %v907_v12 }
 0x190   : > { %3975 = vst [vmem:[#allocation50_spill] sm:$0xff] %v3028_v52  ;;  %v852_v29 = vmul.f32 %v2946_v48, %v838_v0  ;;  %v3052_v25 = vmul.f32 %v2782_v5, %v2735_v31  ;;  %v3056_v38 = vmul.f32 %v2782_v5, %v2744_v6  ;;  %v3064_v11 = vmul.f32 %v2813_v54, %v2725_v16 }
 0x191   : > { %v891_v46 = vpop.permute.xlu0 %890  ;;  %v826_v41 = vpop.permute.xlu1 %825  ;;  %3976 = vst [vmem:[#allocation51_spill] sm:$0xff] %v3034_v34  ;;  %v3072_v0 = vmul.f32 %v2788_v47, %v2820_v30  ;;  %v916_v6 = vmul.f32 %v2918_v58, %v903_v33  ;;  %v1208_v5 = vmul.f32 %v2544_v36, %v851_v8 }
 0x192   : > { %v846_v22 = vsel %vm833_vm9, %v826_v41, %v802_v28  ;;  %3978 = vst [vmem:[#allocation53_spill] sm:$0xff] %v3052_v25  ;;  %3979 = vst [vmem:[#allocation54_spill] sm:$0xff] %v3056_v38  ;;  %v834_v12 = vsel %vm833_vm9, %v818_v21, %v826_v41  ;;  %v899_v16 = vsel %vm898_vm5, %v2912_v26, %v891_v46 }
 0x193   : > { %v850_v52 = vmul.f32 %v2952_v57, %v846_v22  ;;  %3981 = vst [vmem:[#allocation56_spill] sm:$0xff] %v3064_v11  ;;  %v952_v22 = vmul.f32 %v2863_v50, %v851_v8  ;;  %3982 = vst [vmem:[#allocation57_spill] sm:$0xff] %v3072_v0  ;;  %v1080_v11 = vmul.f32 %v2644_v19, %v851_v8 }
 0x194   : > { %v1081_v41 = vmul.f32 %v2644_v19, %v852_v29  ;;  %v1031_v38 = vmul.f32 %v2542_v35, %v915_v27  ;;  %v853_v30 = vmul.f32 %v2960_v60, %v834_v12  ;;  %v1287_v26 = vmul.f32 %v2556_v43, %v915_v27 }
 0x195   : > { %v3046_v61 = vpop.permute.xlu0 %803  ;;  %v3048_v28 = vpop.permute.xlu1 %868  ;;  %v951_v31 = vmul.f32 %v2863_v50, %v850_v52  ;;  %v1207_v56 = vmul.f32 %v2544_v36, %v850_v52  ;;  %v1079_v33 = vmul.f32 %v2644_v19, %v850_v52  ;;  %v917_v34 = vmul.f32 %v2949_v39, %v899_v16 }
 0x196   : > { %v1000_v59 = vadd.f32 %v984_v62, %v952_v22  ;;  %v1256_v52 = vadd.f32 %v2943_v17, %v1208_v5  ;;  %v1032_v62 = vmul.f32 %v2542_v35, %v916_v6  ;;  %v3138_v16 = vmul.f32 %v2853_v14, %v915_v27 }
 0x197   : > { %v999_v21 = vadd.f32 %v2906_v51, %v951_v31  ;;  %v1255_v23 = vadd.f32 %v2902_v24, %v1207_v56  ;;  %v3093_v51 = vmul.f32 %v2813_v54, %v2728_v20  ;;  %v953_v31 = vmul.f32 %v2863_v50, %v852_v29 }
 0x198   : > { %v1209_v24 = vmul.f32 %v2544_v36, %v852_v29  ;;  %v1128_v20 = vadd.f32 %v2889_v42, %v1080_v11  ;;  %v1210_v54 = vmul.f32 %v2544_v36, %v853_v30  ;;  %v3112_v29 = vadd.f32 %v2893_v15, %v1081_v41 }
 0x199   : > { %v820_v0 = vpop.permute.xlu0 %819  ;;  %v3086_v25 = vpop.permute.xlu1 %884  ;;  %v1047_v8 = vadd.f32 %v1031_v38, %v999_v21  ;;  %v1303_v12 = vadd.f32 %v1287_v26, %v1255_v23  ;;  %v911_v38 = vsel %vm898_vm5, %v891_v46, %v2880_v2  ;;  %v1288_v23 = vmul.f32 %v2556_v43, %v916_v6 }
 0x19a   : > { %v3115_v46 = vadd.f32 %v2885_v18, %v1079_v33  ;;  %v954_v2 = vmul.f32 %v2863_v50, %v853_v30  ;;  %v1048_v56 = vadd.f32 %v1032_v62, %v1000_v59  ;;  %v1033_v42 = vmul.f32 %v2542_v35, %v917_v34 }
 0x19b   : > { %1319 = vrot.lane.b32.xlu0 %v1047_v8, %s2345_s22  ;;  %1400 = vrot.lane.b32.xlu1 %v1303_v12, %s2346_s23  ;;  %v1160_v36 = vmul.f32 %v2853_v14, %v916_v6  ;;  %v3121_v11 = vmul.f32 %v2957_v55, %v911_v38  ;;  %v1304_v5 = vadd.f32 %v1288_v23, %v1256_v52 }
 0x19c   : > { %v1289_v15 = vmul.f32 %v2556_v43, %v917_v34  ;;  %v1001_v50 = vadd.f32 %v2974_v44, %v953_v31  ;;  %v3133_v59 = vmul.f32 %v2788_v47, %v2804_v10  ;;  %v1257_v33 = vadd.f32 %v2968_v9, %v1209_v24 }
 0x19d   : > { %v812_v7 = vpop.permute.xlu0 %811  ;;  %v877_v17 = vpop.permute.xlu1 %876  ;;  %v3135_v6 = vadd.f32 %v1160_v36, %v1128_v20  ;;  %v1258_v26 = vadd.f32 %v2982_v53, %v1210_v54  ;;  %v3145_v44 = vmul.f32 %v2621_v4, %v2811_v45  ;;  %v1002_v8 = vadd.f32 %v2986_v40, %v954_v2 }
 0x19e   : > { %v839_v22 = vsel %vm833_vm9, %v812_v7, %v820_v0  ;;  %v843_v18 = vsel %vm833_vm9, %v3046_v61, %v812_v7  ;;  %v908_v10 = vsel %vm898_vm5, %v3048_v28, %v877_v17  ;;  %v1049_v27 = vadd.f32 %v1033_v42, %v1001_v50  ;;  %v3985_v42 = vld [vmem:[#allocation46_spill] sm:$0xff] }
 0x19f   : > { %1327 = vrot.lane.b32.xlu0 %v1048_v56, %s2345_s22  ;;  %3983 = vst [vmem:[#allocation58_spill] sm:$0xff] %v3135_v6  ;;  %1408 = vrot.lane.b32.xlu1 %v1304_v5, %s2346_s23  ;;  %3984 = vst [vmem:[#allocation59_spill] sm:$0xff] %v3145_v44  ;;  %v856_v47 = vmul.f32 %v2946_v48, %v839_v22  ;;  %v855_v31 = vmul.f32 %v2926_v3, %v843_v18  ;;  %v3986_v22 = vld [vmem:[#allocation47_spill] sm:$0xff] }
 0x1a0   : > { %v1305_v53 = vadd.f32 %v1289_v15, %v1257_v33  ;;  %v1290_v45 = vmul.f32 %v2556_v43, %v3121_v11  ;;  %v904_v12 = vsel %vm898_vm5, %v877_v17, %v3086_v25  ;;  %v1034_v40 = vmul.f32 %v2542_v35, %v3121_v11  ;;  %v4006_v44 = vld [vmem:[#allocation23_spill] sm:$0xff] }
 0x1a1   : > { %v828_v41 = vpop.permute.xlu0 %827  ;;  %v893_v21 = vpop.permute.xlu1 %892  ;;  %v3171_v38 = vmul.f32 %v2644_v19, %v853_v30  ;;  %v919_v43 = vmul.f32 %v2915_v63, %v908_v10  ;;  %v957_v54 = vmul.f32 %v2536_v32, %v856_v47  ;;  %v3180_v23 = vmul.f32 %v2847_v1, %v855_v31  ;;  %v3988_v10 = vld [vmem:[#allocation39_spill] sm:$0xff] }
 0x1a2   : > { %v847_v9 = vsel %vm833_vm9, %v828_v41, %v3046_v61  ;;  %v835_v52 = vsel %vm833_vm9, %v820_v0, %v828_v41  ;;  %v3168_v61 = vmul.f32 %v2853_v14, %v917_v34  ;;  %v1306_v0 = vadd.f32 %v1290_v45, %v1258_v26 }
 0x1a3   : > { %v854_v24 = vmul.f32 %v2952_v57, %v847_v9  ;;  %1335 = vrot.lane.b32.xlu0 %v1049_v27, %s2345_s22  ;;  %1416 = vrot.lane.b32.xlu1 %v1305_v53, %s2346_s23  ;;  %v1050_v35 = vadd.f32 %v1034_v40, %v1002_v8  ;;  %v956_v34 = vmul.f32 %v2536_v32, %v855_v31  ;;  %v3989_v8 = vld [vmem:[#allocation26_spill] sm:$0xff]  ;;  %v3990_v53 = vld [vmem:[#allocation9_spill] sm:$0xff] }
 0x1a4   : > { %v3183_v19 = vmul.f32 %v2918_v58, %v904_v12  ;;  %v857_v30 = vmul.f32 %v2960_v60, %v835_v52  ;;  %v1212_v2 = vmul.f32 %v2546_v37, %v855_v31  ;;  %v900_v56 = vsel %vm898_vm5, %v3086_v25, %v893_v21  ;;  %v3987_v25 = vld [vmem:[#allocation21_spill] sm:$0xff]  ;;  %v3991_v12 = vld [vmem:[#allocation48_spill] sm:$0xff] }
 0x1a5   : > { %v806_v62 = vpop.permute.xlu0 %805  ;;  %v814_v20 = vpop.permute.xlu1 %813  ;;  %v955_v7 = vmul.f32 %v2536_v32, %v854_v24  ;;  %v1211_v17 = vmul.f32 %v2546_v37, %v854_v24  ;;  %v3194_v15 = vmul.f32 %v2847_v1, %v856_v47  ;;  %v1213_v18 = vmul.f32 %v2546_v37, %v856_v47 }
 0x1a6   : > { %v912_v50 = vsel %vm898_vm5, %v893_v21, %v3048_v28  ;;  %v1035_v26 = vmul.f32 %v3987_v25, %v919_v43  ;;  %v1005_v27 = vadd.f32 %v3988_v10, %v957_v54  ;;  %v3204_v31 = vmul.f32 %v3989_v8, %v919_v43 }
 0x1a7   : > { %1343 = vrot.lane.b32.xlu0 %v1050_v35, %s2345_s22  ;;  %v1003_v36 = vadd.f32 %v3985_v42, %v955_v7  ;;  %v1259_v5 = vadd.f32 %v3986_v22, %v1211_v17  ;;  %1424 = vrot.lane.b32.xlu1 %v1306_v0, %s2346_s23  ;;  %v844_v9 = vsel %vm833_vm9, %v806_v62, %v814_v20  ;;  %v3992_v7 = vld [vmem:[#allocation49_spill] sm:$0xff] }
 0x1a8   : > { %v1291_v47 = vmul.f32 %v3990_v53, %v919_v43  ;;  %v958_v45 = vmul.f32 %v2536_v32, %v857_v30  ;;  %v921_v28 = vmul.f32 %v2949_v39, %v900_v56  ;;  %v1004_v52 = vadd.f32 %v3991_v12, %v956_v34 }
 0x1a9   : > { %v822_v41 = vpop.permute.xlu0 %821  ;;  %v830_v33 = vpop.permute.xlu1 %829  ;;  %v1051_v21 = vadd.f32 %v1035_v26, %v1003_v36  ;;  %v3213_v40 = vmul.f32 %v2957_v55, %v912_v50  ;;  %v1260_v17 = vadd.f32 %v3992_v7, %v1212_v2  ;;  %v3219_v35 = vmul.f32 %v2847_v1, %v857_v30  ;;  %v3994_v26 = vld [vmem:[#allocation8_spill] sm:$0xff] }
 0x1aa   : > { %v848_v0 = vsel %vm833_vm9, %v830_v33, %v806_v62  ;;  %v1307_v54 = vadd.f32 %v1291_v47, %v1259_v5  ;;  %v1214_v43 = vmul.f32 %v2546_v37, %v857_v30  ;;  %v859_v32 = vmul.f32 %v2926_v3, %v844_v9 }
 0x1ab   : > { %1321 = vrot.lane.b32.xlu1 %v1051_v21, %s2345_s22  ;;  %v1036_v42 = vmul.f32 %v3987_v25, %v3183_v19  ;;  %v3227_v36 = vmul.f32 %v2847_v1, %v854_v24  ;;  %v840_v62 = vsel %vm833_vm9, %v814_v20, %v822_v41  ;;  %v836_v2 = vsel %vm833_vm9, %v822_v41, %v830_v33  ;;  %v3993_v24 = vld [vmem:[#allocation40_spill] sm:$0xff] }
 0x1ac   : > { %1402 = vrot.lane.b32.xlu0 %v1307_v54, %s2346_s23  ;;  %v1292_v37 = vmul.f32 %v3990_v53, %v3183_v19  ;;  %v1037_v30 = vmul.f32 %v3987_v25, %v921_v28  ;;  %v858_v22 = vmul.f32 %v2952_v57, %v848_v0  ;;  %v1006_v50 = vadd.f32 %v3993_v24, %v958_v45  ;;  %v3995_v54 = vld [vmem:[#allocation51_spill] sm:$0xff]  ;;  %v3998_v24 = vld [vmem:[#allocation52_spill] sm:$0xff] }
 0x1ad   : > { %v871_v56 = vpop.permute.xlu0 %870  ;;  %v879_v34 = vpop.permute.xlu1 %878  ;;  %v1052_v1 = vadd.f32 %v1036_v42, %v1004_v52  ;;  %v1038_v20 = vmul.f32 %v3987_v25, %v3213_v40  ;;  %v3244_v41 = vmul.f32 %v3989_v8, %v921_v28  ;;  %v1216_v10 = vmul.f32 %v3994_v26, %v859_v32 }
 0x1ae   : > { %v909_v5 = vsel %vm898_vm5, %v871_v56, %v879_v34  ;;  %v1308_v33 = vadd.f32 %v1292_v37, %v1260_v17  ;;  %v860_v9 = vmul.f32 %v2946_v48, %v840_v62  ;;  %v861_v47 = vmul.f32 %v2960_v60, %v836_v2  ;;  %v3996_v17 = vld [vmem:[#allocation5_spill] sm:$0xff] }
 0x1af   : > { %1329 = vrot.lane.b32.xlu1 %v1052_v1, %s2345_s22  ;;  %v1293_v52 = vmul.f32 %v3990_v53, %v921_v28  ;;  %v923_v45 = vmul.f32 %v2915_v63, %v909_v5  ;;  %v1261_v7 = vadd.f32 %v3995_v54, %v1213_v18  ;;  %v960_v42 = vmul.f32 %v3996_v17, %v859_v32  ;;  %v3997_v62 = vld [vmem:[#allocation25_spill] sm:$0xff] }
 0x1b0   : > { %1410 = vrot.lane.b32.xlu0 %v1308_v33, %s2346_s23  ;;  %v3260_v2 = vmul.f32 %v3997_v62, %v859_v32  ;;  %v959_v37 = vmul.f32 %v3996_v17, %v858_v22  ;;  %v1053_v28 = vadd.f32 %v1037_v30, %v1005_v27  ;;  %v1262_v33 = vadd.f32 %v3998_v24, %v1214_v43  ;;  %v4001_v43 = vld [vmem:[#allocation7_spill] sm:$0xff] }
 0x1b1   : > { %v887_v21 = vpop.permute.xlu0 %886  ;;  %v895_v12 = vpop.permute.xlu1 %894  ;;  %v961_v18 = vmul.f32 %v3996_v17, %v860_v9  ;;  %v3272_v54 = vmul.f32 %v3997_v62, %v860_v9  ;;  %v4004_v24 = vld [vmem:[#allocation43_spill] sm:$0xff] }
 0x1b2   : > { %v905_v25 = vsel %vm898_vm5, %v879_v34, %v887_v21  ;;  %v901_v0 = vsel %vm898_vm5, %v887_v21, %v895_v12  ;;  %v913_v1 = vsel %vm898_vm5, %v895_v12, %v871_v56  ;;  %v1309_v34 = vadd.f32 %v1293_v52, %v1261_v7  ;;  %v3999_v21 = vld [vmem:[#allocation41_spill] sm:$0xff] }
 0x1b3   : > { %v3264_v5 = vmul.f32 %v2918_v58, %v905_v25  ;;  %v1264_v6 = vadd.f32 %v3999_v21, %v1216_v10  ;;  %4000 = vst [vmem:[#allocation46_spill] sm:$0xff] %v3272_v54  ;;  %v925_v32 = vmul.f32 %v2949_v39, %v901_v0  ;;  %1337 = vrot.lane.b32.xlu1 %v1053_v28, %s2345_s22  ;;  %v4005_v54 = vld [vmem:[#allocation42_spill] sm:$0xff] }
 0x1b4   : > { %v1217_v56 = vmul.f32 %v3994_v26, %v860_v9  ;;  %v1218_v12 = vmul.f32 %v3994_v26, %v861_v47  ;;  %v1039_v52 = vmul.f32 %v4001_v43, %v923_v45  ;;  %1418 = vrot.lane.b32.xlu0 %v1309_v34, %s2346_s23  ;;  %v1294_v10 = vmul.f32 %v3990_v53, %v3213_v40 }
 0x1b5   : > { %v3276_v27 = vpop.permute.xlu0 %823  ;;  %v3278_v30 = vpop.permute.xlu1 %807  ;;  %v962_v25 = vmul.f32 %v3996_v17, %v861_v47  ;;  %v3288_v0 = vmul.f32 %v3997_v62, %v858_v22  ;;  %v3291_v7 = vmul.f32 %v2957_v55, %v913_v1  ;;  %v1054_v28 = vadd.f32 %v1038_v20, %v1006_v50 }
 0x1b6   : > { %v1007_v9 = vadd.f32 %v4004_v24, %v959_v37  ;;  %v3295_v21 = vmul.f32 %v3997_v62, %v861_v47  ;;  %v1310_v4 = vadd.f32 %v1294_v10, %v1262_v33  ;;  %v1040_v34 = vmul.f32 %v4001_v43, %v3264_v5  ;;  %v4007_v37 = vld [vmem:[#allocation44_spill] sm:$0xff] }
 0x1b7   : > { %4002 = vst [vmem:[#allocation47_spill] sm:$0xff] %v3288_v0  ;;  %4003 = vst [vmem:[#allocation21_spill] sm:$0xff] %v3291_v7  ;;  %v1009_v53 = vadd.f32 %v4005_v54, %v961_v18  ;;  %v1215_v17 = vmul.f32 %v3994_v26, %v858_v22  ;;  %v1296_v0 = vmul.f32 %v4006_v44, %v3264_v5  ;;  %1345 = vrot.lane.b32.xlu1 %v1054_v28, %s2345_s22  ;;  %v4008_v62 = vld [vmem:[#allocation28_spill] sm:$0xff]  ;;  %v4010_v18 = vld [vmem:[#allocation53_spill] sm:$0xff] }
 0x1b8   : > { %v1041_v1 = vmul.f32 %v4001_v43, %v925_v32  ;;  %v1266_v47 = vadd.f32 %v4007_v37, %v1218_v12  ;;  %v3307_v33 = vmul.f32 %v4008_v62, %v923_v45  ;;  %1426 = vrot.lane.b32.xlu0 %v1310_v4, %s2346_s23  ;;  %v1055_v10 = vadd.f32 %v1039_v52, %v1007_v9  ;;  %v4012_v37 = vld [vmem:[#allocation54_spill] sm:$0xff] }
 0x1b9   : > { %v881_v50 = vpop.permute.xlu0 %880  ;;  %v873_v20 = vpop.permute.xlu1 %872  ;;  %v1008_v54 = vadd.f32 %v4010_v18, %v960_v42  ;;  %v3312_v22 = vmul.f32 %v4008_v62, %v925_v32  ;;  %v1298_v26 = vmul.f32 %v4006_v44, %v3291_v7  ;;  %v1042_v28 = vmul.f32 %v4001_v43, %v3291_v7  ;;  %v4013_v4 = vld [vmem:[#allocation34_spill] sm:$0xff] }
 0x1ba   : > { %4009 = vst [vmem:[#allocation39_spill] sm:$0xff] %v3307_v33  ;;  %v3320_v12 = vadd.f32 %v3168_v61, %v3112_v29  ;;  %v1010_v33 = vadd.f32 %v4012_v37, %v962_v25  ;;  %v1130_v52 = vadd.f32 %v4013_v4, %v3171_v38  ;;  %v3327_v42 = vadd.f32 %v3138_v16, %v3115_v46  ;;  %v4014_v29 = vld [vmem:[#allocation13_spill] sm:$0xff]  ;;  %v4015_v38 = vld [vmem:[#allocation56_spill] sm:$0xff] }
 0x1bb   : > { %4011 = vst [vmem:[#allocation26_spill] sm:$0xff] %v3312_v22  ;;  %v1056_v24 = vadd.f32 %v1040_v34, %v1008_v54  ;;  %1323 = vrot.lane.b32.xlu1 %v1055_v10, %s2345_s22  ;;  %v1057_v22 = vadd.f32 %v1041_v1, %v1009_v53  ;;  %v1312_v43 = vadd.f32 %v1296_v0, %v1264_v6  ;;  %v4016_v10 = vld [vmem:[#allocation12_spill] sm:$0xff] }
 0x1bc   : > { %v1295_v7 = vmul.f32 %v4006_v44, %v923_v45  ;;  %v1132_v61 = vadd.f32 %v4014_v29, %v3180_v23  ;;  %v910_v25 = vsel %vm898_vm5, %v873_v20, %v881_v50  ;;  %v1263_v34 = vadd.f32 %v4015_v38, %v1215_v17  ;;  %v4021_v4 = vld [vmem:[#allocation24_spill] sm:$0xff] }
 0x1bd   : > { %v897_v9 = vpop.permute.xlu0 %896  ;;  %v889_v18 = vpop.permute.xlu1 %888  ;;  %1331 = vrot.lane.b32.xlu0 %v1056_v24, %s2345_s22  ;;  %v1297_v46 = vmul.f32 %v4006_v44, %v925_v32  ;;  %v1162_v16 = vmul.f32 %v2853_v14, %v3121_v11  ;;  %v1058_v0 = vadd.f32 %v1042_v28, %v1010_v33  ;;  %v1314_v45 = vadd.f32 %v1298_v26, %v1266_v47  ;;  %v4017_v44 = vld [vmem:[#allocation15_spill] sm:$0xff]  ;;  %v4019_v28 = vld [vmem:[#allocation18_spill] sm:$0xff] }
 0x1be   : > { %v914_v6 = vsel %vm898_vm5, %v897_v9, %v873_v20  ;;  %v1265_v53 = vadd.f32 %v3093_v51, %v1217_v56  ;;  %v906_v23 = vsel %vm898_vm5, %v881_v50, %v889_v18  ;;  %v1131_v17 = vadd.f32 %v4016_v10, %v3227_v36 }
 0x1bf   : > { %v3345_v1 = vadd.f32 %v1162_v16, %v1130_v52  ;;  %v1134_v32 = vadd.f32 %v4017_v44, %v3219_v35  ;;  %v927_v14 = vmul.f32 %v2915_v63, %v910_v25  ;;  %v902_v11 = vsel %vm898_vm5, %v889_v18, %v897_v9  ;;  %1339 = vrot.lane.b32.xlu1 %v1057_v22, %s2345_s22  ;;  %v4018_v22 = vld [vmem:[#allocation14_spill] sm:$0xff]  ;;  %v4027_v44 = vld [vmem:[#allocation57_spill] sm:$0xff] }
 0x1c0   : > { %v1311_v51 = vadd.f32 %v1295_v7, %v1263_v34  ;;  %v1164_v56 = vmul.f32 %v3989_v8, %v3183_v19  ;;  %v3358_v50 = vmul.f32 %v2957_v55, %v914_v6  ;;  %v1313_v36 = vadd.f32 %v1297_v46, %v1265_v53  ;;  %v4023_v9 = vld [vmem:[#allocation22_spill] sm:$0xff] }
 0x1c1   : > { %v816_v20 = vpop.permute.xlu1 %815  ;;  %1347 = vrot.lane.b32.xlu0 %v1058_v0, %s2345_s22  ;;  %v3368_v47 = vmul.f32 %v2918_v58, %v906_v23  ;;  %v3375_v33 = vmul.f32 %v2949_v39, %v902_v11  ;;  %v3378_v54 = vadd.f32 %v3204_v31, %v1131_v17  ;;  %v1133_v26 = vadd.f32 %v4018_v22, %v3194_v15  ;;  %v4020_v58 = vld [vmem:[#allocation30_spill] sm:$0xff]  ;;  %v4031_v22 = vld [vmem:[#allocation16_spill] sm:$0xff] }
 0x1c2   : > { %v841_v35 = vsel %vm833_vm9, %v816_v20, %v3276_v27  ;;  %v845_v63 = vsel %vm833_vm9, %v3278_v30, %v816_v20  ;;  %v3372_v55 = vadd.f32 %v1164_v56, %v1132_v61  ;;  %v1136_v24 = vadd.f32 %v4019_v28, %v3260_v2  ;;  %v4024_v61 = vld [vmem:[#allocation55_spill] sm:$0xff]  ;;  %v4026_v53 = vld [vmem:[#allocation10_spill] sm:$0xff] }
 0x1c3   : > { %v863_v7 = vmul.f32 %v2926_v3, %v845_v63  ;;  %v864_v19 = vmul.f32 %v2946_v48, %v841_v35  ;;  %v1171_v37 = vmul.f32 %v4020_v58, %v927_v14  ;;  %v3386_v3 = vmul.f32 %v4021_v4, %v927_v14  ;;  %v4022_v48 = vld [vmem:[#allocation6_spill] sm:$0xff]  ;;  %1412 = vrot.lane.b32.xlu1 %v1312_v43, %s2346_s23  ;;  %v4028_v56 = vld [vmem:[#allocation19_spill] sm:$0xff] }
 0x1c4   : > { %v1043_v18 = vmul.f32 %v4023_v9, %v927_v14  ;;  %v1046_v31 = vmul.f32 %v4023_v9, %v3358_v50  ;;  %v1166_v29 = vmul.f32 %v3989_v8, %v3213_v40  ;;  %v1044_v46 = vmul.f32 %v4023_v9, %v3368_v47  ;;  %v4025_v8 = vld [vmem:[#allocation27_spill] sm:$0xff] }
 0x1c5   : > { %v964_v52 = vmul.f32 %v4022_v48, %v863_v7  ;;  %v832_v39 = vpop.permute.xlu1 %831  ;;  %1404 = vrot.lane.b32.xlu0 %v1311_v51, %s2346_s23  ;;  %v965_v43 = vmul.f32 %v4022_v48, %v864_v19  ;;  %v1092_v40 = vmul.f32 %v4025_v8, %v863_v7  ;;  %v1220_v23 = vmul.f32 %v4026_v53, %v863_v7  ;;  %v4029_v7 = vld [vmem:[#allocation21_spill] sm:$0xff] }
 0x1c6   : > { %v837_v15 = vsel %vm833_vm9, %v3276_v27, %v832_v39  ;;  %v849_v2 = vsel %vm833_vm9, %v832_v39, %v3278_v30  ;;  %v1173_v27 = vmul.f32 %v4020_v58, %v3375_v33  ;;  %v3410_v16 = vadd.f32 %v1166_v29, %v1134_v32 }
 0x1c7   : > { %v1012_v25 = vadd.f32 %v4024_v61, %v964_v52  ;;  %v862_v38 = vmul.f32 %v2952_v57, %v849_v2  ;;  %v865_v34 = vmul.f32 %v2960_v60, %v837_v15  ;;  %v3413_v30 = vadd.f32 %v3244_v41, %v1133_v26  ;;  %1428 = vrot.lane.b32.xlu1 %v1314_v45, %s2346_s23  ;;  %v4032_v26 = vld [vmem:[#allocation35_spill] sm:$0xff] }
 0x1c8   : > { %v1045_v57 = vmul.f32 %v4023_v9, %v3375_v33  ;;  %v1093_v60 = vmul.f32 %v4025_v8, %v864_v19  ;;  %v1221_v17 = vmul.f32 %v4026_v53, %v864_v19  ;;  %v1013_v45 = vadd.f32 %v3133_v59, %v965_v43  ;;  %v4035_v9 = vld [vmem:[#allocation17_spill] sm:$0xff]  ;;  %v4038_v43 = vld [vmem:[#allocation26_spill] sm:$0xff] }
 0x1c9   : > { %v963_v6 = vmul.f32 %v4022_v48, %v862_v38  ;;  %v966_v0 = vmul.f32 %v4022_v48, %v865_v34  ;;  %v1219_v10 = vmul.f32 %v4026_v53, %v862_v38  ;;  %1420 = vrot.lane.b32.xlu0 %v1313_v36, %s2346_s23  ;;  %v1060_v41 = vadd.f32 %v1044_v46, %v1012_v25  ;;  %v4033_v48 = vld [vmem:[#allocation59_spill] sm:$0xff]  ;;  %v4040_v46 = vld [vmem:[#allocation36_spill] sm:$0xff] }
 0x1ca   : > { %v1091_v11 = vmul.f32 %v4025_v8, %v862_v38  ;;  %v1094_v20 = vmul.f32 %v4025_v8, %v865_v34  ;;  %v1168_v51 = vmul.f32 %v4008_v62, %v3264_v5  ;;  %v1138_v35 = vadd.f32 %v4028_v56, %v3295_v21  ;;  %v4034_v5 = vld [vmem:[#allocation46_spill] sm:$0xff] }
 0x1cb   : > { %v1014_v32 = vadd.f32 %v4027_v44, %v966_v0  ;;  %v1011_v14 = vadd.f32 %v3099_v13, %v963_v6  ;;  %1333 = vrot.lane.b32.xlu1 %v1060_v41, %s2345_s22  ;;  %v1170_v19 = vmul.f32 %v4008_v62, %v4029_v7  ;;  %v4030_v13 = vld [vmem:[#allocation47_spill] sm:$0xff]  ;;  %v1267_v28 = vadd.f32 %v4032_v26, %v1219_v10  ;;  %v4037_v62 = vld [vmem:[#allocation45_spill] sm:$0xff]  ;;  %v4042_v41 = vld [vmem:[#allocation20_spill] sm:$0xff] }
 0x1cc   : > { %v1135_v59 = vadd.f32 %v4031_v22, %v4030_v13  ;;  %v1268_v52 = vadd.f32 %v4033_v48, %v1220_v23  ;;  %v3442_v39 = vadd.f32 %v1168_v51, %v1136_v24  ;;  %v1137_v15 = vadd.f32 %v4035_v9, %v4034_v5  ;;  %v4039_v24 = vld [vmem:[#allocation50_spill] sm:$0xff]  ;;  %v4043_v44 = vld [vmem:[#allocation11_spill] sm:$0xff]  ;;  %v4044_v51 = vld [vmem:[#allocation37_spill] sm:$0xff] }
 0x1cd   : > { %v1062_v63 = vadd.f32 %v1046_v31, %v1014_v32  ;;  %v1059_v36 = vadd.f32 %v1043_v18, %v1011_v14  ;;  %v3447_v21 = vadd.f32 %v1170_v19, %v1138_v35  ;;  %v4036_v18 = vld [vmem:[#allocation39_spill] sm:$0xff]  ;;  %v1140_v2 = vadd.f32 %v4037_v62, %v1092_v40  ;;  %v4041_v40 = vld [vmem:[#allocation38_spill] sm:$0xff]  ;;  %v4045_v35 = vld [vmem:[#allocation32_spill] sm:$0xff] }
 0x1ce   : > { %v3450_v31 = vadd.f32 %v4036_v18, %v1135_v59  ;;  %v1172_v29 = vmul.f32 %v4020_v58, %v3368_v47  ;;  %v3456_v61 = vadd.f32 %v4038_v43, %v1137_v15  ;;  %v1142_v25 = vadd.f32 %v4039_v24, %v1094_v20  ;;  %v4046_v7 = vld [vmem:[#allocation29_spill] sm:$0xff] }
 0x1cf   : > { %1325 = vrot.lane.b32.xlu0 %v1059_v36, %s2345_s22  ;;  %v1174_v38 = vmul.f32 %v4020_v58, %v3358_v50  ;;  %v1139_v8 = vadd.f32 %v4040_v46, %v1091_v11  ;;  %v1222_v6 = vmul.f32 %v4026_v53, %v865_v34  ;;  %1349 = vrot.lane.b32.xlu1 %v1062_v63, %s2345_s22  ;;  %v723_v63 = vand.u32 255, %v4045_v35  ;;  %v4047_v22 = vld [vmem:[#allocation33_spill] sm:$0xff] }
 0x1d0   : > { %v1061_v0 = vadd.f32 %v1045_v57, %v1013_v45  ;;  %v3464_v23 = vadd.f32 %v1172_v29, %v1140_v2  ;;  %v1141_v10 = vadd.f32 %v4041_v40, %v1093_v60  ;;  %v1254_v32 = vmul.f32 %v4043_v44, %v4042_v41  ;;  %v4049_v2 = vld [vmem:[#allocation58_spill] sm:$0xff] }
 0x1d1   : > { %v3469_v14 = vadd.f32 %v1174_v38, %v1142_v25  ;;  %v3471_v20 = vadd.f32 %v1171_v37, %v1139_v8  ;;  %v1269_v58 = vadd.f32 %v4044_v51, %v1221_v17  ;;  %v1315_v11 = vadd.f32 %v3386_v3, %v1267_v28 }
 0x1d2   : > { %v1300_v34 = vmul.f32 %v4021_v4, %v3368_v47  ;;  %v3478_v57 = vadd.f32 %v1173_v27, %v1141_v10  ;;  %v1301_v60 = vmul.f32 %v4021_v4, %v3375_v33  ;;  %v1270_v45 = vadd.f32 %v1254_v32, %v1222_v6  ;;  %v3490_v27 = vpop.permute.xlu0 %1502 }
 0x1d3   : > { %1341 = vrot.lane.b32.xlu0 %v1061_v0, %s2345_s22  ;;  %1406 = vrot.lane.b32.xlu1 %v1315_v11, %s2346_s23  ;;  %v1302_v3 = vmul.f32 %v4021_v4, %v3358_v50  ;;  %v716_v19 = vand.u32 255, %v4046_v7  ;;  %vm779_vm12 = vcmp.ge.s32.totalorder %v723_v63, 16  ;;  %v709_v50 = vand.u32 255, %v2859_v49  ;;  %s323_s22 = sand.u32 1, %s2323_s10  }
 0x1d4   : > { %v1316_v53 = vadd.f32 %v1300_v34, %v1268_v52  ;;  %v1317_v37 = vadd.f32 %v1301_v60, %v1269_v58  ;;  %v730_v59 = vand.u32 255, %v4047_v22  ;;  %v4048_v26 = vmov 0.0   ;;  %s1960_s13 = scalar_lea.sflag [#allocation3], %s323_s22 }
 0x1d5   : > { %v1318_v17 = vadd.f32 %v1302_v3, %v1270_v45  ;;  %vm790_vm14 = vcmp.lt.s32.totalorder %v716_v19, 240  ;;  %v3500_v28 = vsel %vm779_vm12, 1.0, %v4048_v26  ;;  %vm777_vm15 = vcmp.ge.s32.totalorder %v709_v50, 16 }
 0x1d6   : > { %v3488_v47 = vpop.permute.xlu1 %1492  ;;  %v3505_v52 = vsel %vm790_vm14, 1.0, %v4048_v26  ;;  %vm792_vm2 = vcmp.lt.s32.totalorder %v730_v59, 240  ;;  %v3516_v24 = vsel %vm777_vm15, 1.0, %v4048_v26 }
 0x1d7   : > { %1414 = vrot.lane.b32.xlu0 %v1316_v53, %s2346_s23  ;;  %1422 = vrot.lane.b32.xlu1 %v1317_v37, %s2346_s23  ;;  %v3519_v25 = vsel %vm792_vm2, 1.0, %v4048_v26 }
 0x1da   : > { %v3492_v33 = vpop.permute.xlu1 %1497 }
 0x1db   : > { %1430 = vrot.lane.b32.xlu0 %v1318_v17, %s2346_s23  ;;  %s2037_s23 = sshll.u32 %s323_s22, 5 }
 0x1dc   : > { %s325_s24 = scalar_lea.vmem [#allocation2], %s2037_s23 }
 0x1dd   : > { %s1974_s26 = sshll.u32 %s325_s24, 4  ;;  %s3852_s26 = int_to_ptr.vmem [resolvable:$true] %s1974_s26 }
 0x1de   : > { %s2269_s14 = scalar_lea.vmem %s3852_s26, 512 }
 0x1df   : > { %p2270_p11 = scmp.ne.s32.totalorder %s3852_s26, %s2269_s14 }
 0x1e1   : > { %p2271_p12 = pnand %p2270_p11, %p2436_p5 }
 0x1e3   : > { %p2272_p13 = pneg %p2271_p12 }
 0x20d   : > { %v1320_v56 = vpop.permute.xlu0 %1319  ;;  %v1401_v36 = vpop.permute.xlu1 %1400 }
 0x211   : > { %v1328_v13 = vpop.permute.xlu0 %1327  ;;  %v1409_v4 = vpop.permute.xlu1 %1408 }
 0x212   : > { %v1360_v48 = vsel %vm1351_vm13, %v1320_v56, %v1328_v13  ;;  %v1441_v60 = vsel %vm1432_vm0, %v1401_v36, %v1409_v4 }
 0x213   : > { %v1385_v29 = vadd.f32 %v1360_v48, %v4049_v2 }
 0x215   : > { %v1336_v5 = vpop.permute.xlu0 %1335  ;;  %v1417_v9 = vpop.permute.xlu1 %1416 }
 0x216   : > { %v1356_v15 = vsel %vm1351_vm13, %v1328_v13, %v1336_v5  ;;  %v1437_v18 = vsel %vm1432_vm0, %v1409_v4, %v1417_v9 }
 0x217   : > { %v1370_v62 = vmul.f32 %v3500_v28, %v1356_v15  ;;  %v1450_v43 = vmul.f32 %v3505_v52, %v1437_v18 }
 0x219   : > { %v1386_v38 = vadd.f32 %v1370_v62, %v3320_v12  ;;  %v1344_v46 = vpop.permute.xlu0 %1343  ;;  %v1466_v8 = vadd.f32 %v1450_v43, %v1385_v29  ;;  %v1425_v6 = vpop.permute.xlu1 %1424  ;;  %v4050_v12 = vld [vmem:[#allocation31_spill] sm:$0xff] }
 0x21a   : > { %v1352_v0 = vsel %vm1351_vm13, %v1336_v5, %v1344_v46  ;;  %v1364_v40 = vsel %vm1351_vm13, %v1344_v46, %v1320_v56  ;;  %v1433_v10 = vsel %vm1432_vm0, %v1417_v9, %v1425_v6  ;;  %v1445_v41 = vsel %vm1432_vm0, %v1425_v6, %v1401_v36 }
 0x21b   : > { %v1368_v44 = vmul.f32 %v3516_v24, %v1364_v40  ;;  %v1387_v32 = vadd.f32 %v1352_v0, %v3345_v1  ;;  %v3533_v51 = vadd.f32 %v4050_v12, %v1466_v8  ;;  %v1452_v58 = vmul.f32 %v3519_v25, %v1445_v41 }
 0x21c   : > { %v1467_v11 = vadd.f32 %v1433_v10, %v1386_v38 }
 0x21d   : > { %v1384_v34 = vadd.f32 %v1368_v44, %v3327_v42  ;;  %v1522_v53 = vmul.f32 %v3533_v51, %v3533_v51  ;;  %v1468_v37 = vadd.f32 %v1452_v58, %v1387_v32  ;;  %v1322_v3 = vpop.permute.xlu1 %1321 }
 0x21e   : > { %v3542_v45 = vadd.f32 %v4050_v12, %v1467_v11  ;;  %v1403_v17 = vpop.permute.xlu0 %1402 }
 0x21f   : > { %v1465_v1 = vadd.f32 %v1441_v60, %v1384_v34  ;;  %v3547_v35 = vadd.f32 %v4050_v12, %v1468_v37  ;;  %v1538_v42 = vmul.f32 %v1522_v53, %v3533_v51 }
 0x220   : > { %v1523_v56 = vmul.f32 %v3542_v45, %v3542_v45 }
 0x221   : > { %v3551_v63 = vadd.f32 %v4050_v12, %v1465_v1  ;;  %v1524_v7 = vmul.f32 %v3547_v35, %v3547_v35  ;;  %v1330_v19 = vpop.permute.xlu1 %1329  ;;  %v1554_v13 = vmul.f32 0.044715, %v1538_v42 }
 0x222   : > { %v1539_v36 = vmul.f32 %v1523_v56, %v3542_v45  ;;  %v1411_v50 = vpop.permute.xlu0 %1410  ;;  %v1361_v5 = vsel %vm1351_vm13, %v1322_v3, %v1330_v19 }
 0x223   : > { %v1521_v4 = vmul.f32 %v3551_v63, %v3551_v63  ;;  %v1540_v59 = vmul.f32 %v1524_v7, %v3547_v35  ;;  %v1570_v48 = vadd.f32 %v1554_v13, %v3533_v51  ;;  %v1389_v0 = vadd.f32 %v1361_v5, %v3372_v55 }
 0x224   : > { %v1555_v22 = vmul.f32 0.044715, %v1539_v36 }
 0x225   : > { %v1537_v26 = vmul.f32 %v1521_v4, %v3551_v63  ;;  %v1338_v9 = vpop.permute.xlu1 %1337  ;;  %v1556_v15 = vmul.f32 0.044715, %v1540_v59  ;;  %v1586_v43 = vmul.f32 0.7978846, %v1570_v48 }
 0x226   : > { %v1571_v18 = vadd.f32 %v1555_v22, %v3542_v45  ;;  %v1357_v62 = vsel %vm1351_vm13, %v1330_v19, %v1338_v9  ;;  %v1419_v2 = vpop.permute.xlu0 %1418 }
 0x227   : > { %v1553_v29 = vmul.f32 0.044715, %v1537_v26  ;;  %v1374_v38 = vmul.f32 %v3500_v28, %v1357_v62  ;;  %v1438_v46 = vsel %vm1432_vm0, %v1411_v50, %v1419_v2  ;;  %v1572_v8 = vadd.f32 %v1556_v15, %v3547_v35 }
 0x228   : > { %v1587_v6 = vmul.f32 0.7978846, %v1571_v18  ;;  %v1454_v40 = vmul.f32 %v3505_v52, %v1438_v46  ;;  %2193 = vtanh.f32 %v1586_v43 }
 0x229   : > { %v1569_v10 = vadd.f32 %v1553_v29, %v3551_v63  ;;  %v1346_v41 = vpop.permute.xlu1 %1345  ;;  %v1390_v44 = vadd.f32 %v1374_v38, %v3413_v30  ;;  %v1588_v32 = vmul.f32 0.7978846, %v1572_v8 }
 0x22a   : > { %2195 = vtanh.f32 %v1587_v6  ;;  %v1470_v12 = vadd.f32 %v1454_v40, %v1389_v0  ;;  %v1353_v58 = vsel %vm1351_vm13, %v1338_v9, %v1346_v41  ;;  %v1365_v11 = vsel %vm1351_vm13, %v1346_v41, %v1322_v3  ;;  %v1427_v34 = vpop.permute.xlu0 %1426 }
 0x22b   : > { %v1585_v60 = vmul.f32 0.7978846, %v1569_v10  ;;  %v1372_v55 = vmul.f32 %v3516_v24, %v1365_v11  ;;  %v1391_v53 = vadd.f32 %v1353_v58, %v3410_v16  ;;  %v1434_v37 = vsel %vm1432_vm0, %v1419_v2, %v1427_v34 }
 0x22c   : > { %v1446_v30 = vsel %vm1432_vm0, %v1427_v34, %v1403_v17  ;;  %v3585_v1 = vadd.f32 %v3488_v47, %v1470_v12  ;;  %v1471_v42 = vadd.f32 %v1434_v37, %v1390_v44  ;;  %2197 = vtanh.f32 %v1588_v32 }
 0x22d   : > { %v1456_v56 = vmul.f32 %v3519_v25, %v1446_v30  ;;  %v1388_v3 = vadd.f32 %v1372_v55, %v3378_v54  ;;  %v1324_v36 = vpop.permute.xlu1 %1323  ;;  %2199 = vtanh.f32 %v1585_v60  ;;  %v1442_v16 = vsel %vm1432_vm0, %v1403_v17, %v1411_v50 }
 0x22e   : > { %v1526_v7 = vmul.f32 %v3585_v1, %v3585_v1  ;;  %v3594_v13 = vadd.f32 %v3488_v47, %v1471_v42 }
 0x22f   : > { %v1472_v19 = vadd.f32 %v1456_v56, %v1391_v53  ;;  %v1332_v4 = vpop.permute.xlu0 %1331  ;;  %v1469_v22 = vadd.f32 %v1442_v16, %v1388_v3 }
 0x230   : > { %v1362_v59 = vsel %vm1351_vm13, %v1324_v36, %v1332_v4  ;;  %v1527_v54 = vmul.f32 %v3594_v13, %v3594_v13  ;;  %v1542_v17 = vmul.f32 %v1526_v7, %v3585_v1 }
 0x231   : > { %v3599_v26 = vadd.f32 %v3488_v47, %v1472_v19  ;;  %v3605_v50 = vadd.f32 %v3488_v47, %v1469_v22  ;;  %v1393_v48 = vadd.f32 %v1362_v59, %v3442_v39  ;;  %v1340_v5 = vpop.permute.xlu1 %1339 }
 0x232   : > { %v2194_v9 = vpop.eup %2193  ;;  %v1543_v18 = vmul.f32 %v1527_v54, %v3594_v13  ;;  %v1358_v62 = vsel %vm1351_vm13, %v1332_v4, %v1340_v5  ;;  %v1558_v29 = vmul.f32 0.044715, %v1542_v17 }
 0x233   : > { %v1528_v15 = vmul.f32 %v3599_v26, %v3599_v26  ;;  %v1348_v2 = vpop.permute.xlu0 %1347  ;;  %v1378_v38 = vmul.f32 %v3500_v28, %v1358_v62  ;;  %v1618_v46 = vadd.f32 1.0, %v2194_v9  ;;  %v1525_v12 = vmul.f32 %v3605_v50, %v3605_v50 }
 0x234   : > { %v2196_v43 = vpop.eup %2195  ;;  %v1354_v47 = vsel %vm1351_vm13, %v1340_v5, %v1348_v2  ;;  %v1366_v39 = vsel %vm1351_vm13, %v1348_v2, %v1324_v36  ;;  %v1559_v8 = vmul.f32 0.044715, %v1543_v18  ;;  %v1574_v53 = vadd.f32 %v1558_v29, %v3585_v1 }
 0x235   : > { %v1376_v6 = vmul.f32 %v3516_v24, %v1366_v39  ;;  %v1395_v0 = vadd.f32 %v1354_v47, %v3447_v21  ;;  %v1619_v40 = vadd.f32 1.0, %v2196_v43  ;;  %v1413_v10 = vpop.permute.xlu1 %1412  ;;  %v1394_v41 = vadd.f32 %v1378_v38, %v3456_v61 }
 0x236   : > { %v1634_v44 = vmul.f32 0.5, %v1618_v46  ;;  %v1544_v32 = vmul.f32 %v1528_v15, %v3599_v26  ;;  %v2198_v58 = vpop.eup %2197  ;;  %v1575_v55 = vadd.f32 %v1559_v8, %v3594_v13  ;;  %v1541_v4 = vmul.f32 %v1525_v12, %v3605_v50 }
 0x237   : > { %v1392_v11 = vadd.f32 %v1376_v6, %v3450_v31  ;;  %v1405_v34 = vpop.permute.xlu0 %1404  ;;  %v1635_v60 = vmul.f32 0.5, %v1619_v40  ;;  %v2200_v21 = vpop.eup %2199  ;;  %v1620_v61 = vadd.f32 1.0, %v2198_v58  ;;  %v1590_v22 = vmul.f32 0.7978846, %v1574_v53 }
 0x238   : > { %v1443_v37 = vsel %vm1432_vm0, %v1405_v34, %v1413_v10  ;;  %v3630_v30 = vmul.f32 %v1634_v44, %v3533_v51  ;;  %v1560_v56 = vmul.f32 0.044715, %v1544_v32  ;;  %v1617_v31 = vadd.f32 1.0, %v2200_v21 }
 0x239   : > { %v1473_v42 = vadd.f32 %v1443_v37, %v1392_v11  ;;  %v3633_v3 = vmul.f32 %v1635_v60, %v3542_v45  ;;  %v1591_v36 = vmul.f32 0.7978846, %v1575_v55  ;;  %v1429_v16 = vpop.permute.xlu1 %1428  ;;  %v1636_v7 = vmul.f32 0.5, %v1620_v61 }
 0x23a   : > { %v1576_v19 = vadd.f32 %v1560_v56, %v3599_v26  ;;  %v1447_v51 = vsel %vm1432_vm0, %v1429_v16, %v1405_v34  ;;  %v1633_v17 = vmul.f32 0.5, %v1617_v31  ;;  %v1557_v46 = vmul.f32 0.044715, %v1541_v4 }
 0x23b   : > { %v3638_v59 = vadd.f32 %v3492_v33, %v1473_v42  ;;  %v1421_v54 = vpop.permute.xlu0 %1420  ;;  %2201 = vtanh.f32 %v1591_v36  ;;  %v1460_v45 = vmul.f32 %v3519_v25, %v1447_v51  ;;  %v3648_v15 = vmul.f32 %v1636_v7, %v3547_v35 }
 0x23c   : > { %v1435_v5 = vsel %vm1432_vm0, %v1421_v54, %v1429_v16  ;;  %v1439_v9 = vsel %vm1432_vm0, %v1413_v10, %v1421_v54  ;;  %v3654_v29 = vmul.f32 %v1633_v17, %v3551_v63  ;;  %v1592_v39 = vmul.f32 0.7978846, %v1576_v19 }
 0x23d   : > { %v1529_v18 = vmul.f32 %v3638_v59, %v3638_v59  ;;  %v1458_v62 = vmul.f32 %v3505_v52, %v1439_v9  ;;  %v1475_v2 = vadd.f32 %v1435_v5, %v1394_v41  ;;  %v1476_v43 = vadd.f32 %v1460_v45, %v1395_v0  ;;  %v1334_v38 = vpop.permute.xlu1 %1333 }
 0x23e   : > { %v1762_v47 = vadd.f32 %v3648_v15, %v3633_v3  ;;  %v1673_v40 = vadd.f32 %v3630_v30, %v3654_v29  ;;  %2203 = vtanh.f32 %v1592_v39  ;;  %v1573_v0 = vadd.f32 %v1557_v46, %v3605_v50 }
 0x23f   : > { %v1545_v8 = vmul.f32 %v1529_v18, %v3638_v59  ;;  %v1474_v35 = vadd.f32 %v1458_v62, %v1393_v48  ;;  %v3660_v6 = vadd.f32 %v3492_v33, %v1475_v2  ;;  %v3665_v10 = vadd.f32 %v3492_v33, %v1476_v43 }
 0x240   : > { %1763 = vadd.xlane.f32.xlu0 %v1762_v47  ;;  %1674 = vadd.xlane.f32.xlu1 %v1673_v40  ;;  %v1589_v58 = vmul.f32 0.7978846, %v1573_v0  ;;  %2205 = vtanh.f32 %v1590_v22 }
 0x241   : > { %v1326_v63 = vpop.permute.xlu0 %1325  ;;  %v1561_v41 = vmul.f32 0.044715, %v1545_v8  ;;  %v3669_v44 = vadd.f32 %v3492_v33, %v1474_v35  ;;  %v1531_v48 = vmul.f32 %v3660_v6, %v3660_v6  ;;  %v1532_v32 = vmul.f32 %v3665_v10, %v3665_v10  ;;  %v1350_v12 = vpop.permute.xlu1 %1349 }
 0x242   : > { %v1367_v60 = vsel %vm1351_vm13, %v1350_v12, %v1326_v63  ;;  %2207 = vtanh.f32 %v1589_v58  ;;  %v1363_v56 = vsel %vm1351_vm13, %v1326_v63, %v1334_v38 }
 0x243   : > { %v1530_v11 = vmul.f32 %v3669_v44, %v3669_v44  ;;  %v1547_v34 = vmul.f32 %v1531_v48, %v3660_v6  ;;  %v1577_v33 = vadd.f32 %v1561_v41, %v3638_v59  ;;  %v1380_v55 = vmul.f32 %v3516_v24, %v1367_v60 }
 0x244   : > { %v1548_v21 = vmul.f32 %v1532_v32, %v3665_v10  ;;  %v1397_v54 = vadd.f32 %v1363_v56, %v3464_v23 }
 0x245   : > { %v1342_v53 = vpop.permute.xlu0 %1341  ;;  %v2202_v37 = vpop.eup %2201  ;;  %v1563_v61 = vmul.f32 0.044715, %v1547_v34  ;;  %v1546_v31 = vmul.f32 %v1530_v11, %v3669_v44  ;;  %v1593_v4 = vmul.f32 0.7978846, %v1577_v33  ;;  %v1396_v17 = vadd.f32 %v1380_v55, %v3471_v20 }
 0x246   : > { %v1359_v42 = vsel %vm1351_vm13, %v1334_v38, %v1342_v53  ;;  %v1407_v36 = vpop.permute.xlu1 %1406  ;;  %v1355_v16 = vsel %vm1351_vm13, %v1342_v53, %v1350_v12  ;;  %v1623_v7 = vadd.f32 1.0, %v2202_v37  ;;  %v1564_v22 = vmul.f32 0.044715, %v1548_v21 }
 0x247   : > { %v1382_v24 = vmul.f32 %v3500_v28, %v1359_v42  ;;  %v1562_v19 = vmul.f32 0.044715, %v1546_v31  ;;  %v1579_v51 = vadd.f32 %v1563_v61, %v3660_v6  ;;  %2209 = vtanh.f32 %v1593_v4 }
 0x248   : > { %v1639_v5 = vmul.f32 0.5, %v1623_v7  ;;  %v1580_v28 = vadd.f32 %v1564_v22, %v3665_v10  ;;  %v2204_v62 = vpop.eup %2203  ;;  %v1399_v2 = vadd.f32 %v1355_v16, %v3469_v14 }
 0x249   : > { %v1415_v45 = vpop.permute.xlu0 %1414  ;;  %v1578_v18 = vadd.f32 %v1562_v19, %v3669_v44  ;;  %v1398_v47 = vadd.f32 %v1382_v24, %v3478_v57  ;;  %v1595_v23 = vmul.f32 0.7978846, %v1579_v51  ;;  %v1624_v39 = vadd.f32 1.0, %v2204_v62 }
 0x24a   : > { %v1444_v9 = vsel %vm1432_vm0, %v1407_v36, %v1415_v45  ;;  %v1423_v43 = vpop.permute.xlu1 %1422  ;;  %v3703_v46 = vmul.f32 %v1639_v5, %v3594_v13  ;;  %v2206_v35 = vpop.eup %2205  ;;  %v1596_v0 = vmul.f32 0.7978846, %v1580_v28 }
 0x24b   : > { %v1477_v38 = vadd.f32 %v1444_v9, %v1396_v17  ;;  %v1440_v20 = vsel %vm1432_vm0, %v1415_v45, %v1423_v43  ;;  %v1594_v8 = vmul.f32 0.7978846, %v1578_v18  ;;  %2211 = vtanh.f32 %v1595_v23 }
 0x24c   : > { %v1462_v40 = vmul.f32 %v3505_v52, %v1440_v20  ;;  %v1640_v48 = vmul.f32 0.5, %v1624_v39  ;;  %v1622_v32 = vadd.f32 1.0, %v2206_v35  ;;  %v2208_v13 = vpop.eup %2207 }
 0x24d   : > { %v3707_v63 = vadd.f32 %v3490_v27, %v1477_v38  ;;  %v1431_v14 = vpop.permute.xlu0 %1430  ;;  %v1621_v60 = vadd.f32 1.0, %v2208_v13  ;;  %2213 = vtanh.f32 %v1594_v8 }
 0x24e   : > { %v1436_v57 = vsel %vm1432_vm0, %v1423_v43, %v1431_v14  ;;  %v1448_v41 = vsel %vm1432_vm0, %v1431_v14, %v1407_v36  ;;  %v1478_v12 = vadd.f32 %v1462_v40, %v1397_v54  ;;  %v3717_v34 = vmul.f32 %v1640_v48, %v3599_v26 }
 0x24f   : > { %v1533_v58 = vmul.f32 %v3707_v63, %v3707_v63  ;;  %v1464_v52 = vmul.f32 %v3519_v25, %v1448_v41  ;;  %v1479_v11 = vadd.f32 %v1436_v57, %v1398_v47  ;;  %v1638_v33 = vmul.f32 0.5, %v1622_v32 }
 0x250   : > { %v3720_v55 = vadd.f32 %v3490_v27, %v1478_v12  ;;  %v1765_v37 = vadd.f32 %v3717_v34, %v3703_v46  ;;  %v1637_v25 = vmul.f32 0.5, %v1621_v60  ;;  %2215 = vtanh.f32 %v1596_v0 }
 0x251   : > { %v1549_v49 = vmul.f32 %v1533_v58, %v3707_v63  ;;  %v1480_v53 = vadd.f32 %v1464_v52, %v1399_v2  ;;  %v3724_v21 = vadd.f32 %v3490_v27, %v1479_v11  ;;  %v2210_v31 = vpop.eup %2209  ;;  %v3737_v16 = vmul.f32 %v1638_v33, %v3585_v1 }
 0x252   : > { %v1534_v26 = vmul.f32 %v3720_v55, %v3720_v55  ;;  %1766 = vadd.xlane.f32.xlu1 %v1765_v37  ;;  %v3734_v36 = vmul.f32 %v1637_v25, %v3605_v50 }
 0x253   : > { %v1565_v61 = vmul.f32 0.044715, %v1549_v49  ;;  %v1520_v56 = vadd.f32 %v3490_v27, %v1480_v53  ;;  %v1535_v42 = vmul.f32 %v3724_v21, %v3724_v21  ;;  %v1625_v27 = vadd.f32 1.0, %v2210_v31 }
 0x254   : > { %v1550_v19 = vmul.f32 %v1534_v26, %v3720_v55  ;;  %v1676_v4 = vadd.f32 %v3737_v16, %v3734_v36 }
 0x255   : > { %v1536_v24 = vmul.f32 %v1520_v56, %v1520_v56  ;;  %v1551_v7 = vmul.f32 %v1535_v42, %v3724_v21  ;;  %v1581_v22 = vadd.f32 %v1565_v61, %v3707_v63  ;;  %v2212_v51 = vpop.eup %2211  ;;  %v1641_v62 = vmul.f32 0.5, %v1625_v27 }
 0x256   : > { %v1566_v17 = vmul.f32 0.044715, %v1550_v19  ;;  %1677 = vadd.xlane.f32.xlu0 %v1676_v4  ;;  %v1627_v50 = vadd.f32 1.0, %v2212_v51 }
 0x257   : > { %v1567_v54 = vmul.f32 0.044715, %v1551_v7  ;;  %v1552_v45 = vmul.f32 %v1536_v24, %v1520_v56  ;;  %v1597_v5 = vmul.f32 0.7978846, %v1581_v22  ;;  %v2214_v28 = vpop.eup %2213  ;;  %v3747_v40 = vmul.f32 %v1641_v62, %v3638_v59 }
 0x258   : > { %v1582_v1 = vadd.f32 %v1566_v17, %v3720_v55  ;;  %v1626_v2 = vadd.f32 1.0, %v2214_v28  ;;  %v1643_v20 = vmul.f32 0.5, %v1627_v50  ;;  %v1665_v50 = vld [vmem:[%s3899_s5] sm:$0xff] }
 0x259   : > { %v1568_v9 = vmul.f32 0.044715, %v1552_v45  ;;  %v1583_v18 = vadd.f32 %v1567_v54, %v3724_v21  ;;  %2217 = vtanh.f32 %v1597_v5 }
 0x25a   : > { %v1598_v43 = vmul.f32 0.7978846, %v1582_v1  ;;  %v2216_v23 = vpop.eup %2215  ;;  %v1642_v39 = vmul.f32 0.5, %v1626_v2  ;;  %v3755_v41 = vmul.f32 %v1643_v20, %v3660_v6  ;;  %v1668_v2 = vld [vmem:[%s3899_s5 + $0x18] sm:$0xff] }
 0x25b   : > { %v1584_v38 = vadd.f32 %v1568_v9, %v1520_v56  ;;  %v1599_v47 = vmul.f32 0.7978846, %v1583_v18  ;;  %v1628_v8 = vadd.f32 1.0, %v2216_v23 }
 0x25c   : > { %2219 = vtanh.f32 %v1598_v43  ;;  %v3750_v14 = vmul.f32 %v1642_v39, %v3669_v44 }
 0x25d   : > { %v1600_v35 = vmul.f32 0.7978846, %v1584_v38  ;;  %2221 = vtanh.f32 %v1599_v47  ;;  %v1644_v0 = vmul.f32 0.5, %v1628_v8 }
 0x25e   : > { %v1679_v57 = vadd.f32 %v3750_v14, %v3747_v40 }
 0x25f   : > { %2223 = vtanh.f32 %v1600_v35  ;;  %v3758_v48 = vmul.f32 %v1644_v0, %v3665_v10 }
 0x260   : > { %1680 = vadd.xlane.f32.xlu0 %v1679_v57 }
 0x261   : > { %v1768_v32 = vadd.f32 %v3758_v48, %v3755_v41 }
 0x263   : > { %v2218_v59 = vpop.eup %2217  ;;  %1769 = vadd.xlane.f32.xlu1 %v1768_v32 }
 0x264   : > { %v1629_v13 = vadd.f32 1.0, %v2218_v59 }
 0x266   : > { %v2220_v44 = vpop.eup %2219  ;;  %v1645_v52 = vmul.f32 0.5, %v1629_v13 }
 0x267   : > { %v2222_v12 = vpop.eup %2221  ;;  %v1630_v58 = vadd.f32 1.0, %v2220_v44 }
 0x268   : > { %v1631_v60 = vadd.f32 1.0, %v2222_v12  ;;  %v3763_v53 = vmul.f32 %v1645_v52, %v3707_v63 }
 0x269   : > { %v2224_v11 = vpop.eup %2223  ;;  %v1646_v33 = vmul.f32 0.5, %v1630_v58 }
 0x26a   : > { %v1632_v49 = vadd.f32 1.0, %v2224_v11  ;;  %v1647_v6 = vmul.f32 0.5, %v1631_v60 }
 0x26b   : > { %v3766_v10 = vmul.f32 %v1646_v33, %v3720_v55 }
 0x26c   : > { %v1648_v37 = vmul.f32 0.5, %v1632_v49  ;;  %v3771_v26 = vmul.f32 %v1647_v6, %v3724_v21  ;;  %v1666_v21 = vld [vmem:[%s3899_s5 + $0x8] sm:$0xff] }
 0x26d   : > { %v1682_v25 = vadd.f32 %v3766_v10, %v3763_v53 }
 0x26e   : > { %v3773_v61 = vmul.f32 %v1648_v37, %v1520_v56  ;;  %v1667_v56 = vld [vmem:[%s3899_s5 + $0x10] sm:$0xff] }
 0x26f   : > { %1683 = vadd.xlane.f32.xlu0 %v1682_v25 }
 0x270   : > { %v1771_v42 = vadd.f32 %v3773_v61, %v3771_v26 }
 0x272   : > { %1772 = vadd.xlane.f32.xlu1 %v1771_v42 }
 0x2cd   : > { %v1764_v31 = vpop.xlane.xlu0 %1763  ;;  %v1675_v63 = vpop.xlane.xlu1 %1674 }
 0x2ce   : > { %v1686_v27 = vmul.f32 0.00390625, %v1675_v63  ;;  %v1774_v54 = vmul.f32 0.00390625, %v1764_v31 }
 0x2d0   : > { %v1690_v5 = vmul.f32 %v1686_v27, %v1665_v50  ;;  %v1778_v18 = vmul.f32 %v1774_v54, %v1665_v50 }
 0x2d2   : > { %v1694_v38 = vsel %vm378_vm1, %v1690_v5, 0.0  ;;  %v1782_v35 = vsel %vm378_vm1, %v1778_v18, 0.0 }
 0x2df   : > { %v1767_v7 = vpop.xlane.xlu1 %1766 }
 0x2e0   : > { %v1775_v22 = vmul.f32 0.00390625, %v1767_v7 }
 0x2e2   : > { %v1779_v1 = vmul.f32 %v1775_v22, %v1666_v21 }
 0x2e3   : > { %v1678_v24 = vpop.xlane.xlu0 %1677 }
 0x2e4   : > { %v1687_v19 = vmul.f32 0.00390625, %v1678_v24  ;;  %v1783_v47 = vsel %vm378_vm1, %v1779_v1, 0.0 }
 0x2e5   : > { %v1784_v59 = vadd.f32 %v1783_v47, %v1782_v35  ;;  %v1671_v47 = vld [vmem:[%s3900_s6 + $0x10] sm:$0xff] }
 0x2e6   : > { %v1691_v17 = vmul.f32 %v1687_v19, %v1666_v21 }
 0x2e8   : > { %v1695_v28 = vsel %vm378_vm1, %v1691_v17, 0.0  ;;  %v1670_v17 = vld [vmem:[%s3900_s6 + $0x8] sm:$0xff] }
 0x2e9   : > { %v1696_v39 = vadd.f32 %v1695_v28, %v1694_v38  ;;  %v1672_v38 = vld [vmem:[%s3900_s6 + $0x18] sm:$0xff] }
 0x2ed   : > { %v1681_v55 = vpop.xlane.xlu0 %1680 }
 0x2ee   : > { %v1688_v51 = vmul.f32 0.00390625, %v1681_v55 }
 0x2f0   : > { %v1770_v4 = vpop.xlane.xlu1 %1769  ;;  %v1692_v9 = vmul.f32 %v1688_v51, %v1667_v56 }
 0x2f1   : > { %v1776_v45 = vmul.f32 0.00390625, %v1770_v4 }
 0x2f2   : > { %v1697_v23 = vsel %vm378_vm1, %v1692_v9, 0.0 }
 0x2f3   : > { %v1780_v62 = vmul.f32 %v1776_v45, %v1667_v56  ;;  %v1698_v13 = vadd.f32 %v1697_v23, %v1696_v39  ;;  %v1669_v45 = vld [vmem:[%s3900_s6] sm:$0xff] }
 0x2f5   : > { %v1785_v0 = vsel %vm378_vm1, %v1780_v62, 0.0 }
 0x2f6   : > { %v1786_v58 = vadd.f32 %v1785_v0, %v1784_v59 }
 0x2fc   : > { %v1684_v43 = vpop.xlane.xlu0 %1683 }
 0x2fd   : > { %v1689_v20 = vmul.f32 0.00390625, %v1684_v43 }
 0x2ff   : > { %v1773_v8 = vpop.xlane.xlu1 %1772  ;;  %v1693_v57 = vmul.f32 %v1689_v20, %v1668_v2 }
 0x300   : > { %v1777_v32 = vmul.f32 0.00390625, %v1773_v8 }
 0x301   : > { %v1699_v44 = vsel %vm378_vm1, %v1693_v57, 0.0 }
 0x302   : > { %v1781_v12 = vmul.f32 %v1777_v32, %v1668_v2  ;;  %v1700_v52 = vadd.f32 %v1699_v44, %v1698_v13  ;;  %v1859_v44 = vld [vmem:[%s3902_s8] sm:$0xff] }
 0x304   : > { %v1787_v11 = vsel %vm378_vm1, %v1781_v12, 0.0  ;;  %v1701_v60 = vrot.slane %v1700_v52, 4 }
 0x305   : > { %v1788_v33 = vadd.f32 %v1787_v11, %v1786_v58 }
 0x306   : > { %v1702_v49 = vadd.f32 %v1701_v60, %v1700_v52 }
 0x307   : > { %v1789_v6 = vrot.slane %v1788_v33, 4 }
 0x308   : > { %v1703_v37 = vrot.slane %v1702_v49, 2 }
 0x309   : > { %v1790_v25 = vadd.f32 %v1789_v6, %v1788_v33 }
 0x30a   : > { %v1704_v42 = vadd.f32 %v1703_v37, %v1702_v49 }
 0x30b   : > { %v1791_v31 = vrot.slane %v1790_v25, 2 }
 0x30c   : > { %v1705_v63 = vrot.slane %v1704_v42, 1 }
 0x30d   : > { %v1792_v24 = vadd.f32 %v1791_v31, %v1790_v25 }
 0x30e   : > { %v1706_v7 = vadd.f32 %v1705_v63, %v1704_v42 }
 0x30f   : > { %v1793_v55 = vrot.slane %v1792_v24, 1 }
 0x310   : > { %v2060_v19 = vmul.f32 -1.442695, %v1706_v7 }
 0x311   : > { %v1794_v4 = vadd.f32 %v1793_v55, %v1792_v24 }
 0x312   : > { %2225 = vpow2.f32 %v2060_v19 }
 0x313   : > { %v2065_v27 = vmul.f32 -1.442695, %v1794_v4 }
 0x315   : > { %2227 = vpow2.f32 %v2065_v27 }
 0x31c   : > { %v2226_v22 = vpop.eup %2225 }
 0x31d   : > { %v1710_v51 = vadd.f32 1.0, %v2226_v22 }
 0x31f   : > { %v2228_v21 = vpop.eup %2227  ;;  %2229 = vrcp.f32 %v1710_v51 }
 0x320   : > { %v1798_v56 = vadd.f32 1.0, %v2228_v21 }
 0x322   : > { %2231 = vrcp.f32 %v1798_v56 }
 0x329   : > { %v2230_v54 = vpop.eup %2229 }
 0x32a   : > { %v1713_v50 = vmul.f32 %v2230_v54, %v1706_v7 }
 0x32c   : > { %v2232_v5 = vpop.eup %2231  ;;  %v1715_v1 = vmul.f32 %v1713_v50, %v1670_v17  ;;  %v1714_v9 = vmul.f32 %v1713_v50, %v1669_v45  ;;  %v1717_v39 = vmul.f32 %v1713_v50, %v1672_v38  ;;  %v1716_v8 = vmul.f32 %v1713_v50, %v1671_v47 }
 0x32d   : > { %v1801_v18 = vmul.f32 %v2232_v5, %v1794_v4 }
 0x32e   : > { %v1721_v28 = vsel %vm378_vm1, %v1715_v1, 0.0  ;;  %v1718_v62 = vsel %vm378_vm1, %v1714_v9, 0.0  ;;  %v1727_v35 = vsel %vm378_vm1, %v1717_v39, 0.0  ;;  %v1724_v0 = vsel %vm378_vm1, %v1716_v8, 0.0 }
 0x32f   : > { %v1803_v2 = vmul.f32 %v1801_v18, %v1670_v17  ;;  %v1802_v43 = vmul.f32 %v1801_v18, %v1669_v45  ;;  %1722 = vadd.xlane.f32.xlu1 %v1721_v28  ;;  %1719 = vadd.xlane.f32.xlu0 %v1718_v62  ;;  %v1805_v57 = vmul.f32 %v1801_v18, %v1672_v38 }
 0x330   : > { %v1804_v32 = vmul.f32 %v1801_v18, %v1671_v47 }
 0x331   : > { %v1809_v23 = vsel %vm378_vm1, %v1803_v2, 0.0  ;;  %v1806_v20 = vsel %vm378_vm1, %v1802_v43, 0.0  ;;  %v1815_v59 = vsel %vm378_vm1, %v1805_v57, 0.0 }
 0x332   : > { %v1812_v13 = vsel %vm378_vm1, %v1804_v32, 0.0  ;;  %vm1865_vm1 = vcmask 261120  }
 0x333   : > { %1810 = vadd.xlane.f32.xlu1 %v1809_v23  ;;  %1807 = vadd.xlane.f32.xlu0 %v1806_v20 }
 0x337   : > { %1728 = vadd.xlane.f32.xlu1 %v1727_v35  ;;  %1725 = vadd.xlane.f32.xlu0 %v1724_v0 }
 0x33b   : > { %1816 = vadd.xlane.f32.xlu1 %v1815_v59  ;;  %1813 = vadd.xlane.f32.xlu0 %v1812_v13 }
 0x351   : > { %1862 = vperm.xlu0 %2156, %v1859_v44  }
 0x3bc   : > { %v1723_v12 = vpop.xlane.xlu1 %1722  ;;  %v1720_v58 = vpop.xlane.xlu0 %1719 }
 0x3bd   : > { %v2062_v52 = vmul.f32 -1.442695, %v1723_v12  ;;  %v2061_v11 = vmul.f32 -1.442695, %v1720_v58 }
 0x3bf   : > { %2233 = vpow2.f32 %v2062_v52 }
 0x3c0   : > { %2235 = vpow2.f32 %v2061_v11  ;;  %v1811_v60 = vpop.xlane.xlu1 %1810  ;;  %v1808_v33 = vpop.xlane.xlu0 %1807 }
 0x3c1   : > { %v2067_v49 = vmul.f32 -1.442695, %v1811_v60  ;;  %v2066_v6 = vmul.f32 -1.442695, %v1808_v33 }
 0x3c3   : > { %2237 = vpow2.f32 %v2067_v49 }
 0x3c4   : > { %2239 = vpow2.f32 %v2066_v6  ;;  %v1729_v37 = vpop.xlane.xlu1 %1728  ;;  %v1726_v25 = vpop.xlane.xlu0 %1725 }
 0x3c5   : > { %v2064_v42 = vmul.f32 -1.442695, %v1729_v37  ;;  %v2063_v31 = vmul.f32 -1.442695, %v1726_v25  ;;  %v2265_v37 = vld [vmem:[%s2464_s16] sm:$0xff] }
 0x3c7   : > { %2241 = vpow2.f32 %v2064_v42  ;;  %v2266_v42 = vld [vmem:[%s2464_s16 + $0x8] sm:$0xff] }
 0x3c8   : > { %2243 = vpow2.f32 %v2063_v31  ;;  %v1817_v63 = vpop.xlane.xlu1 %1816  ;;  %v1814_v24 = vpop.xlane.xlu0 %1813 }
 0x3c9   : > { %v2234_v7 = vpop.eup %2233  ;;  %v2069_v55 = vmul.f32 -1.442695, %v1817_v63  ;;  %v2068_v27 = vmul.f32 -1.442695, %v1814_v24 }
 0x3ca   : > { %v2236_v19 = vpop.eup %2235  ;;  %v1743_v4 = vadd.f32 1.0, %v2234_v7 }
 0x3cb   : > { %v1742_v22 = vadd.f32 1.0, %v2236_v19  ;;  %2245 = vpow2.f32 %v2069_v55 }
 0x3cc   : > { %2247 = vrcp.f32 %v1743_v4  ;;  %v2267_v4 = vld [vmem:[%s2464_s16 + $0x10] sm:$0xff] }
 0x3cd   : > { %v2238_v51 = vpop.eup %2237  ;;  %2249 = vrcp.f32 %v1742_v22 }
 0x3ce   : > { %v2240_v21 = vpop.eup %2239  ;;  %v1831_v56 = vadd.f32 1.0, %v2238_v51  ;;  %2251 = vpow2.f32 %v2068_v27  ;;  %v2268_v51 = vld [vmem:[%s2464_s16 + $0x18] sm:$0xff]  ;;  %s2347_s16 = smov [#allocation2]  }
 0x3cf   : > { %v1830_v54 = vadd.f32 1.0, %v2240_v21  ;;  %s2273_s17 = sshll.u32 %s2347_s16, 4  ;;  %s2274_s17 = int_to_ptr.vmem [resolvable:$false] %s2273_s17 }
 0x3d0   : > { %2253 = vrcp.f32 %v1831_v56  ;;  %s2275_s21 = scalar_lea.vmem %s2274_s17, 1024  ;;  %p2276_p0 = scmp.lt.s32.totalorder %s3852_s26, %s2274_s17 }
 0x3d1   : > { %v2242_v17 = vpop.eup %2241  ;;  %2255 = vrcp.f32 %v1830_v54  ;;  %p2277_p1 = scmp.lt.s32.totalorder %s2275_s21, %s2269_s14 }
 0x3d2   : > { %v2244_v45 = vpop.eup %2243  ;;  %v1745_v50 = vadd.f32 1.0, %v2242_v17 }
 0x3d3   : > { %v1744_v5 = vadd.f32 1.0, %v2244_v45  ;;  %p2278_p2 = por %p2277_p1, %p2276_p0 }
 0x3d4   : > { %2257 = vrcp.f32 %v1745_v50 }
 0x3d5   : > { %v2246_v1 = vpop.eup %2245  ;;  %2259 = vrcp.f32 %v1744_v5  ;;  %p2279_p3 = pnand %p2278_p2, %p2272_p13 }
 0x3d6   : > { %v2248_v9 = vpop.eup %2247  ;;  %v1833_v18 = vadd.f32 1.0, %v2246_v1 }
 0x3d7   : > { %v2250_v28 = vpop.eup %2249  ;;  %v1757_v62 = vmul.f32 %v2248_v9, %v3737_v16  ;;  %v1756_v2 = vmul.f32 %v2248_v9, %v3734_v36 }
 0x3d8   : > { %v2252_v43 = vpop.eup %2251  ;;  %2261 = vrcp.f32 %v1833_v18  ;;  %v1755_v38 = vmul.f32 %v2250_v28, %v3630_v30  ;;  %v1754_v47 = vmul.f32 %v2250_v28, %v3654_v29 }
 0x3d9   : > { %v1832_v23 = vadd.f32 1.0, %v2252_v43 }
 0x3da   : > { %v2254_v20 = vpop.eup %2253  ;;  %v1852_v39 = vpack.c.bf16 %v1757_v62, %v1755_v38  ;;  %v1851_v8 = vpack.c.bf16 %v1756_v2, %v1754_v47 }
 0x3db   : > { %v2256_v35 = vpop.eup %2255  ;;  %2263 = vrcp.f32 %v1832_v23  ;;  %v1845_v0 = vmul.f32 %v2254_v20, %v3717_v34  ;;  %v1844_v57 = vmul.f32 %v2254_v20, %v3703_v46 }
 0x3dc   : > { %1869 = vmatprep.subr.bf16.mxu0 %v1852_v39  ;;  %v1843_v16 = vmul.f32 %v2256_v35, %v3648_v15  ;;  %v1842_v36 = vmul.f32 %v2256_v35, %v3633_v3 }
 0x3dd   : > { %1870 = vmatpush1.bf16.msra.mxu0 %v1851_v8 }
 0x3de   : > { %v2258_v32 = vpop.eup %2257  ;;  %v1854_v30 = vpack.c.bf16 %v1845_v0, %v1843_v16  ;;  %v1853_v59 = vpack.c.bf16 %v1844_v57, %v1842_v36 }
 0x3df   : > { %v2260_v29 = vpop.eup %2259  ;;  %v1761_v13 = vmul.f32 %v2258_v32, %v3766_v10  ;;  %v1760_v44 = vmul.f32 %v2258_v32, %v3763_v53  ;;  %v1850_v53 = vld [vmem:[%s3901_s7] sm:$0xf] }
 0x3e0   : > { %1910 = vmatprep.subr.bf16.mxu1 %v1854_v30  ;;  %v1759_v12 = vmul.f32 %v2260_v29, %v3750_v14  ;;  %v1758_v34 = vmul.f32 %v2260_v29, %v3747_v40 }
 0x3e1   : > { %1911 = vmatpush1.bf16.msra.mxu1 %v1853_v59 }
 0x3e2   : > { %v2262_v46 = vpop.eup %2261  ;;  %v1856_v58 = vpack.c.bf16 %v1761_v13, %v1759_v12  ;;  %v1855_v15 = vpack.c.bf16 %v1760_v44, %v1758_v34 }
 0x3e3   : > { %v1849_v3 = vmul.f32 %v2262_v46, %v3773_v61  ;;  %v1848_v52 = vmul.f32 %v2262_v46, %v3771_v26  ;;  %v1863_v26 = vpop.permute.xlu0 %1862 }
 0x3e4   : > { %1871 = vmatprep.subr.bf16.mxu0 %v1856_v58 }
 0x3e5   : > { %v2264_v11 = vpop.eup %2263  ;;  %1872 = vmatpush1.bf16.msra.mxu0 %v1855_v15 }
 0x3e6   : > { %v1847_v40 = vmul.f32 %v2264_v11, %v3758_v48  ;;  %v1846_v14 = vmul.f32 %v2264_v11, %v3755_v41 }
 0x3e8   : > { %2070 = vmatmul.mubr.msk.bf16.vlgmr.msra.gmra.mrb[8].mxu0 %vm1865_vm1, %v1850_v53  ;;  %v1858_v10 = vpack.c.bf16 %v1849_v3, %v1847_v40  ;;  %v1857_v60 = vpack.c.bf16 %v1848_v52, %v1846_v14 }
 0x3ea   : > { %1912 = vmatprep.subr.bf16.mxu1 %v1858_v10 }
 0x3eb   : > { %1913 = vmatpush1.bf16.msra.mxu1 %v1857_v60 }
 0x3ee   : > { %2071 = vmatmul.mubr.msk.bf16.vlgmr.msra.gmra.mrb[8].mxu1 %vm1865_vm1, %v1850_v53 }
 0x4bb   : > { %v1903_v61 = vpop.f32.mrb[8].mxu0 }
 0x4bc   : > { %v1904_v33 = vadd.f32 %v1903_v61, %v1863_v26  ;;  %v1905_v49 = vpop.f32.mrb[9].mxu0 }
 0x4bd   : > { %v1906_v6 = vadd.f32 %v1905_v49, %v1863_v26  ;;  %v1907_v48 = vpop.f32.mrb[10].mxu0 }
 0x4be   : > { %v1951_v41 = vadd.f32 %v2265_v37, %v1904_v33  ;;  %v1908_v25 = vpop.f32.mrb[11].mxu0 }
 0x4bf   : > { %v1952_v31 = vadd.f32 %v2266_v42, %v1906_v6 }
 0x4c0   : > { %1955 = vst [vmem:[%s325_s24] sm:$0xff] %v1951_v41 }
 0x4c1   : > { %1956 = vst [vmem:[%s325_s24 + $0x8] sm:$0xff] %v1952_v31  ;;  %v1944_v63 = vpop.f32.mrb[8].mxu1 }
 0x4c2   : > { %v1945_v24 = vadd.f32 %v1944_v63, %v1863_v26  ;;  %v1946_v7 = vpop.f32.mrb[9].mxu1 }
 0x4c3   : > { %v1947_v55 = vadd.f32 %v1946_v7, %v1863_v26  ;;  %v1948_v19 = vpop.f32.mrb[10].mxu1 }
 0x4c4   : > { %v1953_v27 = vadd.f32 %v2267_v4, %v1945_v24  ;;  %v1949_v22 = vpop.f32.mrb[11].mxu1 }
 0x4c5   : > { %v1954_v21 = vadd.f32 %v2268_v51, %v1947_v55 }
 0x4c6   : > { %1957 = vst [vmem:[%s325_s24 + $0x10] sm:$0xff] %v1953_v27 }
 0x4c7   : > { %1958 = vst [vmem:[%s325_s24 + $0x18] sm:$0xff] %v1954_v21 }
 0x4c8   : > { %2282 = shalt.err (!%p2279_p3)
}
 0x4c9   : > { %s2283_s22 = scalar_lea.hbm %s3850_s29, 512  ;;  %s2287_s25 = scalar_lea.hbm %s3903_s9, 1024 }
 0x4ca   : > { %p2284_p4 = scmp.ne.s32.totalorder %s3850_s29, %s2283_s22  ;;  %p2288_p9 = scmp.lt.u32.totalorder %s3850_s29, %s3903_s9 }
 0x4cb   : > { %p2289_p10 = scmp.lt.u32.totalorder %s2287_s25, %s2283_s22  ;;  %p2291_p12 = scmp.lt.u32.totalorder %s2283_s22, %s3850_s29 }
 0x4cc   : > { %p2285_p7 = pnand %p2284_p4, %p2436_p5 }
 0x4cd   : > { %p2290_p11 = por %p2289_p10, %p2288_p9 }
 0x4ce   : > { %p2286_p8 = pneg %p2285_p7 }
 0x4cf   : > { %p2292_p13 = por %p2291_p12, %p2290_p11 }
 0x4d1   : > { %p2293_p0 = pnand %p2292_p13, %p2286_p8 }
 0x4d3   : > { %2296 = shalt.err (!%p2293_p0)
}
 0x4d4   : > { %2079 = dma.vmem_to_hbm [thread:$0]  (%p2436_p5), %s3852_s26, 512, %s3850_s29, %s1960_s13  }
 0x4d5 PF: > { %p2085_p1 = scmp.ge.s32.totalorder %s2331_s12, 2  ;;  %s1986_s14 = sand.u32 1, %s2319_s30  }
 0x4d6   : > { %s1987_s16 = scalar_lea.sflag [#allocation3], %s1986_s14 }
 0x4d7   : > { %p2082_p2 = pnand %p2085_p1, %p2440_p6 }
 0x4d9   : > { %2314 = dma.done.wait (!%p2082_p2), %s1987_s16, 512  }
 0x4da   : > { %2316 = vsyncadd (!%p2082_p2), %s1987_s16, 4294966784  ;;  %p19_p3 = scmp.ge.s32.totalorder %s2423_s15, 4   ;;  %s4051_s30 = smov %s2323_s10 }
 0x4db   : > { %s4052_s10 = smov %s2327_s11  ;;  %s4053_s11 = smov %s2434_s18 }
 0x4dc   : > { %s4054_s12 = smov %s2423_s15  ;;  %21 = sbr.rel (!%p19_p3) target bundleno = 3 (0x3), region = 91 }
 0x4e3   :  { %1992 = vsyncpa [#allocation3], 1 }
 0x4e4   :  { %1994 = vsyncpa [#allocation3 + $0x1], 1 }

</bundles_post_ra>
